<compile_context>
chip_gen: v7x
topology: tpu7x:2x2x1
jax: 0.10.0
libtpu: 0.0.40
codegen_flags: <defaults>
</compile_context>

<pallas_src>
import functools
import math

import jax
import jax.numpy as jnp
from jax.experimental import pallas as pl
from jax.experimental.pallas import tpu as pltpu


# ---------------------------------------------------------------------------
# Kernel: whole CrossAttention forward for ONE batch element per grid step.
# ---------------------------------------------------------------------------
def cross_attention_kernel(n_heads, first_norm, has_smi_mask, has_seq_mask, *refs):
    refs = list(refs)
    smi_ref = refs.pop(0)                                   # (1, Ls, D)
    seq_ref = refs.pop(0)                                   # (1, Lk, Dq)
    smi_mask_ref = refs.pop(0) if has_smi_mask else None    # (1, mq, Ls) or None
    seq_mask_ref = refs.pop(0) if has_seq_mask else None    # (1, mq, Lk) or None
    (ln_w_ref, ln_b_ref,
     pf_w1_ref, pf_b1_ref, pf_w2_ref, pf_b2_ref,
     sa_wq_ref, sa_bq_ref, sa_wk_ref, sa_bk_ref, sa_wv_ref, sa_bv_ref,
     sa_wo_ref, sa_bo_ref,
     ea_wq_ref, ea_bq_ref, ea_wk_ref, ea_bk_ref, ea_wv_ref, ea_bv_ref,
     ea_wo_ref, ea_bo_ref,
     ff_w_ref, ff_b_ref,
     out_ref) = refs

    _, Ls, D = smi_ref.shape
    _, Lk, Dq = seq_ref.shape
    H = n_heads
    hd = D // H
    scale = 1.0 / math.sqrt(hd)          # energy / sqrt(hid_dim // n_heads)

    f32 = jnp.float32
    bf16 = jnp.bfloat16

    x = smi_ref[0].astype(f32)           # (Ls, D)  — activation slab, f32 vector math
    seq_bf = seq_ref[0].astype(bf16)     # (Lk, Dq) — only ever an MXU operand

    # Hoisted mask predicates: computed once (masked_fill(mask == 0, -1e10) semantics).
    smi_mask_bool = (smi_mask_ref[0] != 0.0) if has_smi_mask else None   # (mq, Ls)
    seq_mask_bool = (seq_mask_ref[0] != 0.0) if has_seq_mask else None   # (mq, Lk)

    ln_w = ln_w_ref[...]                 # (1, D) f32
    ln_b = ln_b_ref[...]

    def ln(z):                           # LayerNorm(hid_dim), eps=1e-5, f32 math
        mu = jnp.mean(z, axis=-1, keepdims=True)
        var = jnp.mean(jnp.square(z - mu), axis=-1, keepdims=True)
        return (z - mu) * jax.lax.rsqrt(var + 1e-5) * ln_w + ln_b

    def proj(z_bf, w_ref, b_ref):        # bf16 x bf16 matmul, f32 accumulate + f32 bias
        return jnp.dot(z_bf, w_ref[...], preferred_element_type=f32) + b_ref[...]

    def pf(z):                           # PositionwiseFeedforward: Conv1d(k=1) == Linear
        h1 = jnp.maximum(proj(z.astype(bf16), pf_w1_ref, pf_b1_ref), 0.0)
        return proj(h1.astype(bf16), pf_w2_ref, pf_b2_ref)

    def ff(z):                           # Sequential(Linear, ReLU, Dropout) — dropout id
        return jnp.maximum(proj(z.astype(bf16), ff_w_ref, ff_b_ref), 0.0)

    def mha(q2, k2, v2, wo_ref, bo_ref, mask_bool):
        """Multi-head attention with all heads batched into ONE einsum pair."""
        Lq = q2.shape[0]
        Lkv = k2.shape[0]
        # Split heads along lanes and move them onto the einsum batch axis.
        qh = jnp.transpose(q2.astype(bf16).reshape(Lq, H, hd), (1, 0, 2))    # (H, Lq, hd)
        kh = jnp.transpose(k2.astype(bf16).reshape(Lkv, H, hd), (1, 0, 2))   # (H, Lkv, hd)
        vh = jnp.transpose(v2.astype(bf16).reshape(Lkv, H, hd), (1, 0, 2))   # (H, Lkv, hd)

        s = jnp.einsum('hqd,hkd->hqk', qh, kh,
                       preferred_element_type=f32) * scale                   # (H, Lq, Lkv)
        if mask_bool is not None:
            s = jnp.where(mask_bool[None, :, :], s, -1e10)
        s = s - jnp.max(s, axis=-1, keepdims=True)
        p = jnp.exp(s)
        p = p * pl.reciprocal(jnp.sum(p, axis=-1, keepdims=True), approx=True)

        o = jnp.einsum('hqk,hkd->hqd', p.astype(bf16), vh,
                       preferred_element_type=f32)                           # (H, Lq, hd)
        # Merge heads back to lanes -> single K=D output projection (fc).
        o2 = jnp.transpose(o, (1, 0, 2)).reshape(Lq, D)
        return jnp.dot(o2.astype(bf16), wo_ref[...],
                       preferred_element_type=f32) + bo_ref[...]

    def self_attn(z):                    # sa(z, z, z, smi_mask)
        zb = z.astype(bf16)
        q2 = proj(zb, sa_wq_ref, sa_bq_ref)
        k2 = proj(zb, sa_wk_ref, sa_bk_ref)
        v2 = proj(zb, sa_wv_ref, sa_bv_ref)
        return mha(q2, k2, v2, sa_wo_ref, sa_bo_ref, smi_mask_bool)

    def cross_attn(z):                   # ea(z, seq, seq, seq_mask)
        q2 = proj(z.astype(bf16), ea_wq_ref, ea_bq_ref)
        k2 = proj(seq_bf, ea_wk_ref, ea_bk_ref)
        v2 = proj(seq_bf, ea_wv_ref, ea_bv_ref)
        return mha(q2, k2, v2, ea_wo_ref, ea_bo_ref, seq_mask_bool)

    if first_norm:
        # Matches PyTorch first_norm branch exactly (ff() is never applied there).
        x = x + pf(ln(x))
        xn = ln(x)
        x = x + self_attn(xn)
        x = x + cross_attn(ln(x))
    else:
        x = ln(x + pf(x))
        x = ln(x + self_attn(x))
        x = ln(x + cross_attn(x))
        x = ln(x + ff(x))

    out_ref[...] = x[None].astype(out_ref.dtype)


PARAM_ORDER = ("ln_w", "ln_b",
               "pf_w1", "pf_b1", "pf_w2", "pf_b2",
               "sa_wq", "sa_bq", "sa_wk", "sa_bk", "sa_wv", "sa_bv", "sa_wo", "sa_bo",
               "ea_wq", "ea_bq", "ea_wk", "ea_bk", "ea_wv", "ea_bv", "ea_wo", "ea_bo",
               "ff_w", "ff_b")


# ---------------------------------------------------------------------------
# Wrapper
# ---------------------------------------------------------------------------
def cross_attention_forward(smi, seq, params, n_heads,
                            smi_mask=None, seq_mask=None, first_norm=False):
    """smi: (B, L_smi, smi_dim), seq: (B, L_seq, seq_dim). Returns (B, L_smi, smi_dim) f32."""
    B, Ls, D = smi.shape
    Bk, Lk, Dq = seq.shape
    assert B == Bk and D % n_heads == 0

    f32 = jnp.float32
    bf16 = jnp.bfloat16

    inputs = [smi, seq]
    in_specs = [
        pl.BlockSpec((1, Ls, D), lambda b: (b, 0, 0)),
        pl.BlockSpec((1, Lk, Dq), lambda b: (b, 0, 0)),
    ]

    has_smi_mask = smi_mask is not None
    has_seq_mask = seq_mask is not None

    def prep_mask(m, last):
        # Accept (B, ..., last) masks (e.g. (B,1,last), (B,1,1,last), (B,Lq,last));
        # keep them compact — the broadcast over heads/queries happens in-kernel.
        m = jnp.asarray(m, f32).reshape(B, -1, last)
        return m

    if has_smi_mask:
        m = prep_mask(smi_mask, Ls)
        inputs.append(m)
        in_specs.append(pl.BlockSpec((1, m.shape[1], Ls), lambda b: (b, 0, 0)))
    if has_seq_mask:
        m = prep_mask(seq_mask, Lk)
        inputs.append(m)
        in_specs.append(pl.BlockSpec((1, m.shape[1], Lk), lambda b: (b, 0, 0)))

    # Weight matrices (first dim > 1) go to the MXU -> ship them bf16; biases / LN stay f32.
    for name in PARAM_ORDER:
        p = params[name]
        p = p.astype(bf16) if p.shape[0] > 1 else p.astype(f32)
        inputs.append(p)
        in_specs.append(pl.BlockSpec(p.shape, lambda b: (0, 0)))

    out_shape = jax.ShapeDtypeStruct((B, Ls, D), f32)
    out_spec = pl.BlockSpec((1, Ls, D), lambda b: (b, 0, 0))

    # Advisory cost estimate for XLA scheduling around the custom call.
    P = params["pf_w1"].shape[1]
    mm_flops = 2 * B * Ls * (2 * D * P + 4 * D * D + 2 * D * D + D * D)  # pf, sa, ea(q/o), ff
    mm_flops += 2 * B * Lk * Dq * D * 2                                   # ea k, v
    attn_flops = 2 * B * (2 * Ls * Ls * D + 2 * Ls * Lk * D)
    flops = int(mm_flops + attn_flops)
    transcendentals = int(B * n_heads * (Ls * Ls + Ls * Lk))
    bytes_accessed = int(sum(int(a.size) * a.dtype.itemsize for a in inputs)
                         + B * Ls * D * 4)

    kernel = functools.partial(cross_attention_kernel,
                               n_heads, first_norm, has_smi_mask, has_seq_mask)

    return pl.pallas_call(
        kernel,
        out_shape=out_shape,
        grid_spec=pltpu.PrefetchScalarGridSpec(
            num_scalar_prefetch=0,
            grid=(B,),
            in_specs=in_specs,
            out_specs=out_spec,
        ),
        compiler_params=pltpu.CompilerParams(
            dimension_semantics=("parallel",),       # v7x: shard batch over both TCs
            vmem_limit_bytes=32 * 1024 * 1024,
        ),
        cost_estimate=pl.CostEstimate(flops=flops,
                                      transcendentals=transcendentals,
                                      bytes_accessed=bytes_accessed),
    )(*inputs)


# ---------------------------------------------------------------------------
# Deterministic synthetic parameters (kernel-ready layout: W is (in, out), b is (1, out))
# ---------------------------------------------------------------------------
def init_params(key, smi_dim, seq_dim):
    D = smi_dim          # hid_dim = smi_dim (forced in the PyTorch module)
    P = seq_dim          # PositionwiseFeedforward hidden dim = seq_dim

    shapes = {
        "ln_w": (1, D), "ln_b": (1, D),
        "pf_w1": (D, P), "pf_b1": (1, P), "pf_w2": (P, D), "pf_b2": (1, D),
        "sa_wq": (D, D), "sa_bq": (1, D), "sa_wk": (D, D), "sa_bk": (1, D),
        "sa_wv": (D, D), "sa_bv": (1, D), "sa_wo": (D, D), "sa_bo": (1, D),
        "ea_wq": (D, D), "ea_bq": (1, D), "ea_wk": (P, D), "ea_bk": (1, D),
        "ea_wv": (P, D), "ea_bv": (1, D), "ea_wo": (D, D), "ea_bo": (1, D),
        "ff_w": (D, D), "ff_b": (1, D),
    }
    ks = jax.random.split(key, len(PARAM_ORDER))
    params = {name: jax.random.normal(k, shapes[name], jnp.float32) * 0.1
              for name, k in zip(PARAM_ORDER, ks)}
    params["ln_w"] = params["ln_w"] + 1.0     # LayerNorm weight ~ 1
    return params


# ---------------------------------------------------------------------------
if __name__ == "__main__":
    smi_dim = 32      # hid_dim is forced to smi_dim inside the module
    seq_dim = 64      # also the PF hidden dim (pf_dim = seq_dim)
    n_heads = 4       # head_dim = 8
    B, L_smi, L_seq = 2, 8, 16

    key = jax.random.PRNGKey(0)
    k_smi, k_seq, k_par = jax.random.split(key, 3)
    smi = jax.random.normal(k_smi, (B, L_smi, smi_dim), jnp.float32)
    seq = jax.random.normal(k_seq, (B, L_seq, seq_dim), jnp.float32)
    params = init_params(k_par, smi_dim, seq_dim)

    out = cross_attention_forward(smi, seq, params, n_heads,
                                  smi_mask=None, seq_mask=None, first_norm=False)
    out = jax.block_until_ready(out)
    assert out.shape == (B, L_smi, smi_dim), out.shape
    assert bool(jnp.all(jnp.isfinite(out)))
    print("KERNEL_OK")
</pallas_src>

<mosaic_0001>
module attributes {stable_mosaic.version = 11 : i64} {
  func.func @cross_attention_kernel(%arg0: i32, %arg1: memref<1x8x32xf32, #tpu.memory_space<vmem>>, %arg2: memref<1x16x64xf32, #tpu.memory_space<vmem>>, %arg3: memref<1x32xf32, #tpu.memory_space<vmem>>, %arg4: memref<1x32xf32, #tpu.memory_space<vmem>>, %arg5: memref<32x64xbf16, #tpu.memory_space<vmem>>, %arg6: memref<1x64xf32, #tpu.memory_space<vmem>>, %arg7: memref<64x32xbf16, #tpu.memory_space<vmem>>, %arg8: memref<1x32xf32, #tpu.memory_space<vmem>>, %arg9: memref<32x32xbf16, #tpu.memory_space<vmem>>, %arg10: memref<1x32xf32, #tpu.memory_space<vmem>>, %arg11: memref<32x32xbf16, #tpu.memory_space<vmem>>, %arg12: memref<1x32xf32, #tpu.memory_space<vmem>>, %arg13: memref<32x32xbf16, #tpu.memory_space<vmem>>, %arg14: memref<1x32xf32, #tpu.memory_space<vmem>>, %arg15: memref<32x32xbf16, #tpu.memory_space<vmem>>, %arg16: memref<1x32xf32, #tpu.memory_space<vmem>>, %arg17: memref<32x32xbf16, #tpu.memory_space<vmem>>, %arg18: memref<1x32xf32, #tpu.memory_space<vmem>>, %arg19: memref<64x32xbf16, #tpu.memory_space<vmem>>, %arg20: memref<1x32xf32, #tpu.memory_space<vmem>>, %arg21: memref<64x32xbf16, #tpu.memory_space<vmem>>, %arg22: memref<1x32xf32, #tpu.memory_space<vmem>>, %arg23: memref<32x32xbf16, #tpu.memory_space<vmem>>, %arg24: memref<1x32xf32, #tpu.memory_space<vmem>>, %arg25: memref<32x32xbf16, #tpu.memory_space<vmem>>, %arg26: memref<1x32xf32, #tpu.memory_space<vmem>>, %arg27: memref<1x8x32xf32, #tpu.memory_space<vmem>>) attributes {dimension_semantics = [#tpu.dimension_semantics<parallel>], iteration_bounds = array<i64: 2>, scalar_prefetch = 0 : i64, scratch_operands = 0 : i64, tpu.core_type = #tpu.core_type<tc>, window_params = [{transform_indices = @transform_0, window_bounds = array<i64: 1, 8, 32>}, {transform_indices = @transform_1, window_bounds = array<i64: 1, 16, 64>}, {pipeline_mode = #tpu.pipeline_mode<synchronous>, transform_indices = @transform_2, window_bounds = array<i64: 1, 32>}, {pipeline_mode = #tpu.pipeline_mode<synchronous>, transform_indices = @transform_3, window_bounds = array<i64: 1, 32>}, {pipeline_mode = #tpu.pipeline_mode<synchronous>, transform_indices = @transform_4, window_bounds = array<i64: 32, 64>}, {pipeline_mode = #tpu.pipeline_mode<synchronous>, transform_indices = @transform_5, window_bounds = array<i64: 1, 64>}, {pipeline_mode = #tpu.pipeline_mode<synchronous>, transform_indices = @transform_6, window_bounds = array<i64: 64, 32>}, {pipeline_mode = #tpu.pipeline_mode<synchronous>, transform_indices = @transform_7, window_bounds = array<i64: 1, 32>}, {pipeline_mode = #tpu.pipeline_mode<synchronous>, transform_indices = @transform_8, window_bounds = array<i64: 32, 32>}, {pipeline_mode = #tpu.pipeline_mode<synchronous>, transform_indices = @transform_9, window_bounds = array<i64: 1, 32>}, {pipeline_mode = #tpu.pipeline_mode<synchronous>, transform_indices = @transform_10, window_bounds = array<i64: 32, 32>}, {pipeline_mode = #tpu.pipeline_mode<synchronous>, transform_indices = @transform_11, window_bounds = array<i64: 1, 32>}, {pipeline_mode = #tpu.pipeline_mode<synchronous>, transform_indices = @transform_12, window_bounds = array<i64: 32, 32>}, {pipeline_mode = #tpu.pipeline_mode<synchronous>, transform_indices = @transform_13, window_bounds = array<i64: 1, 32>}, {pipeline_mode = #tpu.pipeline_mode<synchronous>, transform_indices = @transform_14, window_bounds = array<i64: 32, 32>}, {pipeline_mode = #tpu.pipeline_mode<synchronous>, transform_indices = @transform_15, window_bounds = array<i64: 1, 32>}, {pipeline_mode = #tpu.pipeline_mode<synchronous>, transform_indices = @transform_16, window_bounds = array<i64: 32, 32>}, {pipeline_mode = #tpu.pipeline_mode<synchronous>, transform_indices = @transform_17, window_bounds = array<i64: 1, 32>}, {pipeline_mode = #tpu.pipeline_mode<synchronous>, transform_indices = @transform_18, window_bounds = array<i64: 64, 32>}, {pipeline_mode = #tpu.pipeline_mode<synchronous>, transform_indices = @transform_19, window_bounds = array<i64: 1, 32>}, {pipeline_mode = #tpu.pipeline_mode<synchronous>, transform_indices = @transform_20, window_bounds = array<i64: 64, 32>}, {pipeline_mode = #tpu.pipeline_mode<synchronous>, transform_indices = @transform_21, window_bounds = array<i64: 1, 32>}, {pipeline_mode = #tpu.pipeline_mode<synchronous>, transform_indices = @transform_22, window_bounds = array<i64: 32, 32>}, {pipeline_mode = #tpu.pipeline_mode<synchronous>, transform_indices = @transform_23, window_bounds = array<i64: 1, 32>}, {pipeline_mode = #tpu.pipeline_mode<synchronous>, transform_indices = @transform_24, window_bounds = array<i64: 32, 32>}, {pipeline_mode = #tpu.pipeline_mode<synchronous>, transform_indices = @transform_25, window_bounds = array<i64: 1, 32>}, {transform_indices = @transform_26, window_bounds = array<i64: 1, 8, 32>}]} {
    %c0 = arith.constant 0 : index
    %c0_0 = arith.constant 0 : index
    %c0_1 = arith.constant 0 : index
    %0 = vector.load %arg1[%c0, %c0_0, %c0_1] : memref<1x8x32xf32, #tpu.memory_space<vmem>>, vector<1x8x32xf32>
    %1 = vector.shape_cast %0 : vector<1x8x32xf32> to vector<8x32xf32>
    %c0_2 = arith.constant 0 : index
    %c0_3 = arith.constant 0 : index
    %c0_4 = arith.constant 0 : index
    %2 = vector.load %arg2[%c0_2, %c0_3, %c0_4] : memref<1x16x64xf32, #tpu.memory_space<vmem>>, vector<1x16x64xf32>
    %3 = vector.shape_cast %2 : vector<1x16x64xf32> to vector<16x64xf32>
    %4 = arith.truncf %3 : vector<16x64xf32> to vector<16x64xbf16>
    %c0_5 = arith.constant 0 : index
    %c0_6 = arith.constant 0 : index
    %5 = vector.load %arg3[%c0_5, %c0_6] : memref<1x32xf32, #tpu.memory_space<vmem>>, vector<1x32xf32>
    %c0_7 = arith.constant 0 : index
    %c0_8 = arith.constant 0 : index
    %6 = vector.load %arg4[%c0_7, %c0_8] : memref<1x32xf32, #tpu.memory_space<vmem>>, vector<1x32xf32>
    %7 = arith.truncf %1 : vector<8x32xf32> to vector<8x32xbf16>
    %c0_9 = arith.constant 0 : index
    %c0_10 = arith.constant 0 : index
    %8 = vector.load %arg5[%c0_9, %c0_10] : memref<32x64xbf16, #tpu.memory_space<vmem>>, vector<32x64xbf16>
    %cst = arith.constant dense<0.000000e+00> : vector<8x64xf32>
    %9 = tpu.matmul %7, %8, %cst {dimension_numbers = #tpu.dot_dimension_numbers<[1], [0], [0], [1], [0, 0, 1, 1], [], []>} : vector<8x32xbf16>, vector<32x64xbf16>, vector<8x64xf32> -> vector<8x64xf32>
    %c0_11 = arith.constant 0 : index
    %c0_12 = arith.constant 0 : index
    %10 = vector.load %arg6[%c0_11, %c0_12] : memref<1x64xf32, #tpu.memory_space<vmem>>, vector<1x64xf32>
    %11 = vector.broadcast %10 : vector<1x64xf32> to vector<8x64xf32>
    %12 = arith.addf %9, %11 : vector<8x64xf32>
    %cst_13 = arith.constant 0.000000e+00 : f32
    %13 = vector.broadcast %cst_13 : f32 to vector<8x64xf32>
    %14 = arith.maximumf %12, %13 : vector<8x64xf32>
    %15 = arith.truncf %14 : vector<8x64xf32> to vector<8x64xbf16>
    %c0_14 = arith.constant 0 : index
    %c0_15 = arith.constant 0 : index
    %16 = vector.load %arg7[%c0_14, %c0_15] : memref<64x32xbf16, #tpu.memory_space<vmem>>, vector<64x32xbf16>
    %cst_16 = arith.constant dense<0.000000e+00> : vector<8x32xf32>
    %17 = tpu.matmul %15, %16, %cst_16 {dimension_numbers = #tpu.dot_dimension_numbers<[1], [0], [0], [1], [0, 0, 1, 1], [], []>} : vector<8x64xbf16>, vector<64x32xbf16>, vector<8x32xf32> -> vector<8x32xf32>
    %c0_17 = arith.constant 0 : index
    %c0_18 = arith.constant 0 : index
    %18 = vector.load %arg8[%c0_17, %c0_18] : memref<1x32xf32, #tpu.memory_space<vmem>>, vector<1x32xf32>
    %19 = vector.broadcast %18 : vector<1x32xf32> to vector<8x32xf32>
    %20 = arith.addf %17, %19 : vector<8x32xf32>
    %21 = arith.addf %1, %20 : vector<8x32xf32>
    %cst_19 = arith.constant dense<0.000000e+00> : vector<8xf32>
    %22 = vector.multi_reduction <add>, %21, %cst_19 [1] : vector<8x32xf32> to vector<8xf32>
    %23 = vector.shape_cast %22 : vector<8xf32> to vector<8x1xf32>
    %cst_20 = arith.constant 3.200000e+01 : f32
    %24 = vector.broadcast %cst_20 : f32 to vector<8x1xf32>
    %25 = arith.divf %23, %24 : vector<8x1xf32>
    %26 = vector.broadcast %25 : vector<8x1xf32> to vector<8x32xf32>
    %27 = arith.subf %21, %26 : vector<8x32xf32>
    %28 = arith.mulf %27, %27 : vector<8x32xf32>
    %cst_21 = arith.constant dense<0.000000e+00> : vector<8xf32>
    %29 = vector.multi_reduction <add>, %28, %cst_21 [1] : vector<8x32xf32> to vector<8xf32>
    %30 = vector.shape_cast %29 : vector<8xf32> to vector<8x1xf32>
    %cst_22 = arith.constant 3.200000e+01 : f32
    %31 = vector.broadcast %cst_22 : f32 to vector<8x1xf32>
    %32 = arith.divf %30, %31 : vector<8x1xf32>
    %33 = vector.broadcast %25 : vector<8x1xf32> to vector<8x32xf32>
    %34 = arith.subf %21, %33 : vector<8x32xf32>
    %cst_23 = arith.constant 9.99999974E-6 : f32
    %35 = vector.broadcast %cst_23 : f32 to vector<8x1xf32>
    %36 = arith.addf %32, %35 : vector<8x1xf32>
    %37 = math.rsqrt %36 : vector<8x1xf32>
    %38 = vector.broadcast %37 : vector<8x1xf32> to vector<8x32xf32>
    %39 = arith.mulf %34, %38 : vector<8x32xf32>
    %40 = vector.broadcast %5 : vector<1x32xf32> to vector<8x32xf32>
    %41 = arith.mulf %39, %40 : vector<8x32xf32>
    %42 = vector.broadcast %6 : vector<1x32xf32> to vector<8x32xf32>
    %43 = arith.addf %41, %42 : vector<8x32xf32>
    %44 = arith.truncf %43 : vector<8x32xf32> to vector<8x32xbf16>
    %c0_24 = arith.constant 0 : index
    %c0_25 = arith.constant 0 : index
    %45 = vector.load %arg9[%c0_24, %c0_25] : memref<32x32xbf16, #tpu.memory_space<vmem>>, vector<32x32xbf16>
    %cst_26 = arith.constant dense<0.000000e+00> : vector<8x32xf32>
    %46 = tpu.matmul %44, %45, %cst_26 {dimension_numbers = #tpu.dot_dimension_numbers<[1], [0], [0], [1], [0, 0, 1, 1], [], []>} : vector<8x32xbf16>, vector<32x32xbf16>, vector<8x32xf32> -> vector<8x32xf32>
    %c0_27 = arith.constant 0 : index
    %c0_28 = arith.constant 0 : index
    %47 = vector.load %arg10[%c0_27, %c0_28] : memref<1x32xf32, #tpu.memory_space<vmem>>, vector<1x32xf32>
    %48 = vector.broadcast %47 : vector<1x32xf32> to vector<8x32xf32>
    %49 = arith.addf %46, %48 : vector<8x32xf32>
    %c0_29 = arith.constant 0 : index
    %c0_30 = arith.constant 0 : index
    %50 = vector.load %arg11[%c0_29, %c0_30] : memref<32x32xbf16, #tpu.memory_space<vmem>>, vector<32x32xbf16>
    %cst_31 = arith.constant dense<0.000000e+00> : vector<8x32xf32>
    %51 = tpu.matmul %44, %50, %cst_31 {dimension_numbers = #tpu.dot_dimension_numbers<[1], [0], [0], [1], [0, 0, 1, 1], [], []>} : vector<8x32xbf16>, vector<32x32xbf16>, vector<8x32xf32> -> vector<8x32xf32>
    %c0_32 = arith.constant 0 : index
    %c0_33 = arith.constant 0 : index
    %52 = vector.load %arg12[%c0_32, %c0_33] : memref<1x32xf32, #tpu.memory_space<vmem>>, vector<1x32xf32>
    %53 = vector.broadcast %52 : vector<1x32xf32> to vector<8x32xf32>
    %54 = arith.addf %51, %53 : vector<8x32xf32>
    %c0_34 = arith.constant 0 : index
    %c0_35 = arith.constant 0 : index
    %55 = vector.load %arg13[%c0_34, %c0_35] : memref<32x32xbf16, #tpu.memory_space<vmem>>, vector<32x32xbf16>
    %cst_36 = arith.constant dense<0.000000e+00> : vector<8x32xf32>
    %56 = tpu.matmul %44, %55, %cst_36 {dimension_numbers = #tpu.dot_dimension_numbers<[1], [0], [0], [1], [0, 0, 1, 1], [], []>} : vector<8x32xbf16>, vector<32x32xbf16>, vector<8x32xf32> -> vector<8x32xf32>
    %c0_37 = arith.constant 0 : index
    %c0_38 = arith.constant 0 : index
    %57 = vector.load %arg14[%c0_37, %c0_38] : memref<1x32xf32, #tpu.memory_space<vmem>>, vector<1x32xf32>
    %58 = vector.broadcast %57 : vector<1x32xf32> to vector<8x32xf32>
    %59 = arith.addf %56, %58 : vector<8x32xf32>
    %60 = arith.truncf %49 : vector<8x32xf32> to vector<8x32xbf16>
    %61 = vector.shape_cast %60 : vector<8x32xbf16> to vector<8x4x8xbf16>
    %62 = tpu.transpose %61, [1, 0, 2] : vector<8x4x8xbf16> -> vector<4x8x8xbf16>
    %63 = arith.truncf %54 : vector<8x32xf32> to vector<8x32xbf16>
    %64 = vector.shape_cast %63 : vector<8x32xbf16> to vector<8x4x8xbf16>
    %65 = tpu.transpose %64, [1, 0, 2] : vector<8x4x8xbf16> -> vector<4x8x8xbf16>
    %66 = arith.truncf %59 : vector<8x32xf32> to vector<8x32xbf16>
    %67 = vector.shape_cast %66 : vector<8x32xbf16> to vector<8x4x8xbf16>
    %68 = tpu.transpose %67, [1, 0, 2] : vector<8x4x8xbf16> -> vector<4x8x8xbf16>
    "tpu.trace_start"() <{level = 10 : i32, message = "hqd,hkd->hqk"}> : () -> ()
    %cst_39 = arith.constant dense<0.000000e+00> : vector<4x8x8xf32>
    %69 = tpu.matmul %62, %65, %cst_39 {dimension_numbers = #tpu.dot_dimension_numbers<[2], [2], [1], [1], [0, 0, 0, 1, 1, 1], [0], [0]>} : vector<4x8x8xbf16>, vector<4x8x8xbf16>, vector<4x8x8xf32> -> vector<4x8x8xf32>
    "tpu.trace_stop"() : () -> ()
    %cst_40 = arith.constant 0.353553385 : f32
    %70 = vector.broadcast %cst_40 : f32 to vector<4x8x8xf32>
    %71 = arith.mulf %69, %70 : vector<4x8x8xf32>
    %cst_41 = arith.constant dense<0xFF800000> : vector<4x8xf32>
    %72 = vector.multi_reduction <maximumf>, %71, %cst_41 [2] : vector<4x8x8xf32> to vector<4x8xf32>
    %73 = vector.shape_cast %72 : vector<4x8xf32> to vector<4x8x1xf32>
    %74 = vector.broadcast %73 : vector<4x8x1xf32> to vector<4x8x8xf32>
    %75 = arith.subf %71, %74 : vector<4x8x8xf32>
    %76 = math.exp %75 : vector<4x8x8xf32>
    %cst_42 = arith.constant dense<0.000000e+00> : vector<4x8xf32>
    %77 = vector.multi_reduction <add>, %76, %cst_42 [2] : vector<4x8x8xf32> to vector<4x8xf32>
    %78 = vector.shape_cast %77 : vector<4x8xf32> to vector<4x8x1xf32>
    %79 = tpu.reciprocal %78 {approx = true} : vector<4x8x1xf32> -> vector<4x8x1xf32>
    %80 = vector.broadcast %79 : vector<4x8x1xf32> to vector<4x8x8xf32>
    %81 = arith.mulf %76, %80 : vector<4x8x8xf32>
    %82 = arith.truncf %81 : vector<4x8x8xf32> to vector<4x8x8xbf16>
    "tpu.trace_start"() <{level = 10 : i32, message = "hqk,hkd->hqd"}> : () -> ()
    %cst_43 = arith.constant dense<0.000000e+00> : vector<4x8x8xf32>
    %83 = tpu.matmul %82, %68, %cst_43 {dimension_numbers = #tpu.dot_dimension_numbers<[2], [1], [1], [2], [0, 0, 0, 1, 1, 2], [0], [0]>} : vector<4x8x8xbf16>, vector<4x8x8xbf16>, vector<4x8x8xf32> -> vector<4x8x8xf32>
    "tpu.trace_stop"() : () -> ()
    %84 = tpu.transpose %83, [1, 0, 2] : vector<4x8x8xf32> -> vector<8x4x8xf32>
    %85 = vector.shape_cast %84 : vector<8x4x8xf32> to vector<8x32xf32>
    %86 = arith.truncf %85 : vector<8x32xf32> to vector<8x32xbf16>
    %c0_44 = arith.constant 0 : index
    %c0_45 = arith.constant 0 : index
    %87 = vector.load %arg15[%c0_44, %c0_45] : memref<32x32xbf16, #tpu.memory_space<vmem>>, vector<32x32xbf16>
    %cst_46 = arith.constant dense<0.000000e+00> : vector<8x32xf32>
    %88 = tpu.matmul %86, %87, %cst_46 {dimension_numbers = #tpu.dot_dimension_numbers<[1], [0], [0], [1], [0, 0, 1, 1], [], []>} : vector<8x32xbf16>, vector<32x32xbf16>, vector<8x32xf32> -> vector<8x32xf32>
    %c0_47 = arith.constant 0 : index
    %c0_48 = arith.constant 0 : index
    %89 = vector.load %arg16[%c0_47, %c0_48] : memref<1x32xf32, #tpu.memory_space<vmem>>, vector<1x32xf32>
    %90 = vector.broadcast %89 : vector<1x32xf32> to vector<8x32xf32>
    %91 = arith.addf %88, %90 : vector<8x32xf32>
    %92 = arith.addf %43, %91 : vector<8x32xf32>
    %cst_49 = arith.constant dense<0.000000e+00> : vector<8xf32>
    %93 = vector.multi_reduction <add>, %92, %cst_49 [1] : vector<8x32xf32> to vector<8xf32>
    %94 = vector.shape_cast %93 : vector<8xf32> to vector<8x1xf32>
    %cst_50 = arith.constant 3.200000e+01 : f32
    %95 = vector.broadcast %cst_50 : f32 to vector<8x1xf32>
    %96 = arith.divf %94, %95 : vector<8x1xf32>
    %97 = vector.broadcast %96 : vector<8x1xf32> to vector<8x32xf32>
    %98 = arith.subf %92, %97 : vector<8x32xf32>
    %99 = arith.mulf %98, %98 : vector<8x32xf32>
    %cst_51 = arith.constant dense<0.000000e+00> : vector<8xf32>
    %100 = vector.multi_reduction <add>, %99, %cst_51 [1] : vector<8x32xf32> to vector<8xf32>
    %101 = vector.shape_cast %100 : vector<8xf32> to vector<8x1xf32>
    %cst_52 = arith.constant 3.200000e+01 : f32
    %102 = vector.broadcast %cst_52 : f32 to vector<8x1xf32>
    %103 = arith.divf %101, %102 : vector<8x1xf32>
    %104 = vector.broadcast %96 : vector<8x1xf32> to vector<8x32xf32>
    %105 = arith.subf %92, %104 : vector<8x32xf32>
    %cst_53 = arith.constant 9.99999974E-6 : f32
    %106 = vector.broadcast %cst_53 : f32 to vector<8x1xf32>
    %107 = arith.addf %103, %106 : vector<8x1xf32>
    %108 = math.rsqrt %107 : vector<8x1xf32>
    %109 = vector.broadcast %108 : vector<8x1xf32> to vector<8x32xf32>
    %110 = arith.mulf %105, %109 : vector<8x32xf32>
    %111 = vector.broadcast %5 : vector<1x32xf32> to vector<8x32xf32>
    %112 = arith.mulf %110, %111 : vector<8x32xf32>
    %113 = vector.broadcast %6 : vector<1x32xf32> to vector<8x32xf32>
    %114 = arith.addf %112, %113 : vector<8x32xf32>
    %115 = arith.truncf %114 : vector<8x32xf32> to vector<8x32xbf16>
    %c0_54 = arith.constant 0 : index
    %c0_55 = arith.constant 0 : index
    %116 = vector.load %arg17[%c0_54, %c0_55] : memref<32x32xbf16, #tpu.memory_space<vmem>>, vector<32x32xbf16>
    %cst_56 = arith.constant dense<0.000000e+00> : vector<8x32xf32>
    %117 = tpu.matmul %115, %116, %cst_56 {dimension_numbers = #tpu.dot_dimension_numbers<[1], [0], [0], [1], [0, 0, 1, 1], [], []>} : vector<8x32xbf16>, vector<32x32xbf16>, vector<8x32xf32> -> vector<8x32xf32>
    %c0_57 = arith.constant 0 : index
    %c0_58 = arith.constant 0 : index
    %118 = vector.load %arg18[%c0_57, %c0_58] : memref<1x32xf32, #tpu.memory_space<vmem>>, vector<1x32xf32>
    %119 = vector.broadcast %118 : vector<1x32xf32> to vector<8x32xf32>
    %120 = arith.addf %117, %119 : vector<8x32xf32>
    %c0_59 = arith.constant 0 : index
    %c0_60 = arith.constant 0 : index
    %121 = vector.load %arg19[%c0_59, %c0_60] : memref<64x32xbf16, #tpu.memory_space<vmem>>, vector<64x32xbf16>
    %cst_61 = arith.constant dense<0.000000e+00> : vector<16x32xf32>
    %122 = tpu.matmul %4, %121, %cst_61 {dimension_numbers = #tpu.dot_dimension_numbers<[1], [0], [0], [1], [0, 0, 1, 1], [], []>} : vector<16x64xbf16>, vector<64x32xbf16>, vector<16x32xf32> -> vector<16x32xf32>
    %c0_62 = arith.constant 0 : index
    %c0_63 = arith.constant 0 : index
    %123 = vector.load %arg20[%c0_62, %c0_63] : memref<1x32xf32, #tpu.memory_space<vmem>>, vector<1x32xf32>
    %124 = vector.broadcast %123 : vector<1x32xf32> to vector<16x32xf32>
    %125 = arith.addf %122, %124 : vector<16x32xf32>
    %c0_64 = arith.constant 0 : index
    %c0_65 = arith.constant 0 : index
    %126 = vector.load %arg21[%c0_64, %c0_65] : memref<64x32xbf16, #tpu.memory_space<vmem>>, vector<64x32xbf16>
    %cst_66 = arith.constant dense<0.000000e+00> : vector<16x32xf32>
    %127 = tpu.matmul %4, %126, %cst_66 {dimension_numbers = #tpu.dot_dimension_numbers<[1], [0], [0], [1], [0, 0, 1, 1], [], []>} : vector<16x64xbf16>, vector<64x32xbf16>, vector<16x32xf32> -> vector<16x32xf32>
    %c0_67 = arith.constant 0 : index
    %c0_68 = arith.constant 0 : index
    %128 = vector.load %arg22[%c0_67, %c0_68] : memref<1x32xf32, #tpu.memory_space<vmem>>, vector<1x32xf32>
    %129 = vector.broadcast %128 : vector<1x32xf32> to vector<16x32xf32>
    %130 = arith.addf %127, %129 : vector<16x32xf32>
    %131 = arith.truncf %120 : vector<8x32xf32> to vector<8x32xbf16>
    %132 = vector.shape_cast %131 : vector<8x32xbf16> to vector<8x4x8xbf16>
    %133 = tpu.transpose %132, [1, 0, 2] : vector<8x4x8xbf16> -> vector<4x8x8xbf16>
    %134 = arith.truncf %125 : vector<16x32xf32> to vector<16x32xbf16>
    %135 = vector.shape_cast %134 : vector<16x32xbf16> to vector<16x4x8xbf16>
    %136 = tpu.transpose %135, [1, 0, 2] : vector<16x4x8xbf16> -> vector<4x16x8xbf16>
    %137 = arith.truncf %130 : vector<16x32xf32> to vector<16x32xbf16>
    %138 = vector.shape_cast %137 : vector<16x32xbf16> to vector<16x4x8xbf16>
    %139 = tpu.transpose %138, [1, 0, 2] : vector<16x4x8xbf16> -> vector<4x16x8xbf16>
    "tpu.trace_start"() <{level = 10 : i32, message = "hqd,hkd->hqk"}> : () -> ()
    %cst_69 = arith.constant dense<0.000000e+00> : vector<4x8x16xf32>
    %140 = tpu.matmul %133, %136, %cst_69 {dimension_numbers = #tpu.dot_dimension_numbers<[2], [2], [1], [1], [0, 0, 0, 1, 1, 1], [0], [0]>} : vector<4x8x8xbf16>, vector<4x16x8xbf16>, vector<4x8x16xf32> -> vector<4x8x16xf32>
    "tpu.trace_stop"() : () -> ()
    %cst_70 = arith.constant 0.353553385 : f32
    %141 = vector.broadcast %cst_70 : f32 to vector<4x8x16xf32>
    %142 = arith.mulf %140, %141 : vector<4x8x16xf32>
    %cst_71 = arith.constant dense<0xFF800000> : vector<4x8xf32>
    %143 = vector.multi_reduction <maximumf>, %142, %cst_71 [2] : vector<4x8x16xf32> to vector<4x8xf32>
    %144 = vector.shape_cast %143 : vector<4x8xf32> to vector<4x8x1xf32>
    %145 = vector.broadcast %144 : vector<4x8x1xf32> to vector<4x8x16xf32>
    %146 = arith.subf %142, %145 : vector<4x8x16xf32>
    %147 = math.exp %146 : vector<4x8x16xf32>
    %cst_72 = arith.constant dense<0.000000e+00> : vector<4x8xf32>
    %148 = vector.multi_reduction <add>, %147, %cst_72 [2] : vector<4x8x16xf32> to vector<4x8xf32>
    %149 = vector.shape_cast %148 : vector<4x8xf32> to vector<4x8x1xf32>
    %150 = tpu.reciprocal %149 {approx = true} : vector<4x8x1xf32> -> vector<4x8x1xf32>
    %151 = vector.broadcast %150 : vector<4x8x1xf32> to vector<4x8x16xf32>
    %152 = arith.mulf %147, %151 : vector<4x8x16xf32>
    %153 = arith.truncf %152 : vector<4x8x16xf32> to vector<4x8x16xbf16>
    "tpu.trace_start"() <{level = 10 : i32, message = "hqk,hkd->hqd"}> : () -> ()
    %cst_73 = arith.constant dense<0.000000e+00> : vector<4x8x8xf32>
    %154 = tpu.matmul %153, %139, %cst_73 {dimension_numbers = #tpu.dot_dimension_numbers<[2], [1], [1], [2], [0, 0, 0, 1, 1, 2], [0], [0]>} : vector<4x8x16xbf16>, vector<4x16x8xbf16>, vector<4x8x8xf32> -> vector<4x8x8xf32>
    "tpu.trace_stop"() : () -> ()
    %155 = tpu.transpose %154, [1, 0, 2] : vector<4x8x8xf32> -> vector<8x4x8xf32>
    %156 = vector.shape_cast %155 : vector<8x4x8xf32> to vector<8x32xf32>
    %157 = arith.truncf %156 : vector<8x32xf32> to vector<8x32xbf16>
    %c0_74 = arith.constant 0 : index
    %c0_75 = arith.constant 0 : index
    %158 = vector.load %arg23[%c0_74, %c0_75] : memref<32x32xbf16, #tpu.memory_space<vmem>>, vector<32x32xbf16>
    %cst_76 = arith.constant dense<0.000000e+00> : vector<8x32xf32>
    %159 = tpu.matmul %157, %158, %cst_76 {dimension_numbers = #tpu.dot_dimension_numbers<[1], [0], [0], [1], [0, 0, 1, 1], [], []>} : vector<8x32xbf16>, vector<32x32xbf16>, vector<8x32xf32> -> vector<8x32xf32>
    %c0_77 = arith.constant 0 : index
    %c0_78 = arith.constant 0 : index
    %160 = vector.load %arg24[%c0_77, %c0_78] : memref<1x32xf32, #tpu.memory_space<vmem>>, vector<1x32xf32>
    %161 = vector.broadcast %160 : vector<1x32xf32> to vector<8x32xf32>
    %162 = arith.addf %159, %161 : vector<8x32xf32>
    %163 = arith.addf %114, %162 : vector<8x32xf32>
    %cst_79 = arith.constant dense<0.000000e+00> : vector<8xf32>
    %164 = vector.multi_reduction <add>, %163, %cst_79 [1] : vector<8x32xf32> to vector<8xf32>
    %165 = vector.shape_cast %164 : vector<8xf32> to vector<8x1xf32>
    %cst_80 = arith.constant 3.200000e+01 : f32
    %166 = vector.broadcast %cst_80 : f32 to vector<8x1xf32>
    %167 = arith.divf %165, %166 : vector<8x1xf32>
    %168 = vector.broadcast %167 : vector<8x1xf32> to vector<8x32xf32>
    %169 = arith.subf %163, %168 : vector<8x32xf32>
    %170 = arith.mulf %169, %169 : vector<8x32xf32>
    %cst_81 = arith.constant dense<0.000000e+00> : vector<8xf32>
    %171 = vector.multi_reduction <add>, %170, %cst_81 [1] : vector<8x32xf32> to vector<8xf32>
    %172 = vector.shape_cast %171 : vector<8xf32> to vector<8x1xf32>
    %cst_82 = arith.constant 3.200000e+01 : f32
    %173 = vector.broadcast %cst_82 : f32 to vector<8x1xf32>
    %174 = arith.divf %172, %173 : vector<8x1xf32>
    %175 = vector.broadcast %167 : vector<8x1xf32> to vector<8x32xf32>
    %176 = arith.subf %163, %175 : vector<8x32xf32>
    %cst_83 = arith.constant 9.99999974E-6 : f32
    %177 = vector.broadcast %cst_83 : f32 to vector<8x1xf32>
    %178 = arith.addf %174, %177 : vector<8x1xf32>
    %179 = math.rsqrt %178 : vector<8x1xf32>
    %180 = vector.broadcast %179 : vector<8x1xf32> to vector<8x32xf32>
    %181 = arith.mulf %176, %180 : vector<8x32xf32>
    %182 = vector.broadcast %5 : vector<1x32xf32> to vector<8x32xf32>
    %183 = arith.mulf %181, %182 : vector<8x32xf32>
    %184 = vector.broadcast %6 : vector<1x32xf32> to vector<8x32xf32>
    %185 = arith.addf %183, %184 : vector<8x32xf32>
    %186 = arith.truncf %185 : vector<8x32xf32> to vector<8x32xbf16>
    %c0_84 = arith.constant 0 : index
    %c0_85 = arith.constant 0 : index
    %187 = vector.load %arg25[%c0_84, %c0_85] : memref<32x32xbf16, #tpu.memory_space<vmem>>, vector<32x32xbf16>
    %cst_86 = arith.constant dense<0.000000e+00> : vector<8x32xf32>
    %188 = tpu.matmul %186, %187, %cst_86 {dimension_numbers = #tpu.dot_dimension_numbers<[1], [0], [0], [1], [0, 0, 1, 1], [], []>} : vector<8x32xbf16>, vector<32x32xbf16>, vector<8x32xf32> -> vector<8x32xf32>
    %c0_87 = arith.constant 0 : index
    %c0_88 = arith.constant 0 : index
    %189 = vector.load %arg26[%c0_87, %c0_88] : memref<1x32xf32, #tpu.memory_space<vmem>>, vector<1x32xf32>
    %190 = vector.broadcast %189 : vector<1x32xf32> to vector<8x32xf32>
    %191 = arith.addf %188, %190 : vector<8x32xf32>
    %cst_89 = arith.constant 0.000000e+00 : f32
    %192 = vector.broadcast %cst_89 : f32 to vector<8x32xf32>
    %193 = arith.maximumf %191, %192 : vector<8x32xf32>
    %194 = arith.addf %185, %193 : vector<8x32xf32>
    %cst_90 = arith.constant dense<0.000000e+00> : vector<8xf32>
    %195 = vector.multi_reduction <add>, %194, %cst_90 [1] : vector<8x32xf32> to vector<8xf32>
    %196 = vector.shape_cast %195 : vector<8xf32> to vector<8x1xf32>
    %cst_91 = arith.constant 3.200000e+01 : f32
    %197 = vector.broadcast %cst_91 : f32 to vector<8x1xf32>
    %198 = arith.divf %196, %197 : vector<8x1xf32>
    %199 = vector.broadcast %198 : vector<8x1xf32> to vector<8x32xf32>
    %200 = arith.subf %194, %199 : vector<8x32xf32>
    %201 = arith.mulf %200, %200 : vector<8x32xf32>
    %cst_92 = arith.constant dense<0.000000e+00> : vector<8xf32>
    %202 = vector.multi_reduction <add>, %201, %cst_92 [1] : vector<8x32xf32> to vector<8xf32>
    %203 = vector.shape_cast %202 : vector<8xf32> to vector<8x1xf32>
    %cst_93 = arith.constant 3.200000e+01 : f32
    %204 = vector.broadcast %cst_93 : f32 to vector<8x1xf32>
    %205 = arith.divf %203, %204 : vector<8x1xf32>
    %206 = vector.broadcast %198 : vector<8x1xf32> to vector<8x32xf32>
    %207 = arith.subf %194, %206 : vector<8x32xf32>
    %cst_94 = arith.constant 9.99999974E-6 : f32
    %208 = vector.broadcast %cst_94 : f32 to vector<8x1xf32>
    %209 = arith.addf %205, %208 : vector<8x1xf32>
    %210 = math.rsqrt %209 : vector<8x1xf32>
    %211 = vector.broadcast %210 : vector<8x1xf32> to vector<8x32xf32>
    %212 = arith.mulf %207, %211 : vector<8x32xf32>
    %213 = vector.broadcast %5 : vector<1x32xf32> to vector<8x32xf32>
    %214 = arith.mulf %212, %213 : vector<8x32xf32>
    %215 = vector.broadcast %6 : vector<1x32xf32> to vector<8x32xf32>
    %216 = arith.addf %214, %215 : vector<8x32xf32>
    %217 = vector.shape_cast %216 : vector<8x32xf32> to vector<1x8x32xf32>
    %c0_95 = arith.constant 0 : index
    %c0_96 = arith.constant 0 : index
    %c0_97 = arith.constant 0 : index
    %218 = vector.load %arg27[%c0_95, %c0_96, %c0_97] : memref<1x8x32xf32, #tpu.memory_space<vmem>>, vector<1x8x32xf32>
    tpu.vector_store %arg27[%c0_95, %c0_96, %c0_97], %217 {strides = array<i32>} : memref<1x8x32xf32, #tpu.memory_space<vmem>>, vector<1x8x32xf32>,
    return
  }
  func.func @transform_0(%arg0: i32) -> (i32, i32, i32) {
    %c0_i32 = arith.constant 0 : i32
    %c0_i32_0 = arith.constant 0 : i32
    %c0_i32_1 = arith.constant 0 : i32
    return %arg0, %c0_i32, %c0_i32_0 : i32, i32, i32
  }
  func.func @transform_1(%arg0: i32) -> (i32, i32, i32) {
    %c0_i32 = arith.constant 0 : i32
    %c0_i32_0 = arith.constant 0 : i32
    %c0_i32_1 = arith.constant 0 : i32
    return %arg0, %c0_i32, %c0_i32_0 : i32, i32, i32
  }
  func.func @transform_2(%arg0: i32) -> (i32, i32) {
    %c0_i32 = arith.constant 0 : i32
    %c0_i32_0 = arith.constant 0 : i32
    %c0_i32_1 = arith.constant 0 : i32
    return %c0_i32, %c0_i32_0 : i32, i32
  }
  func.func @transform_3(%arg0: i32) -> (i32, i32) {
    %c0_i32 = arith.constant 0 : i32
    %c0_i32_0 = arith.constant 0 : i32
    %c0_i32_1 = arith.constant 0 : i32
    return %c0_i32, %c0_i32_0 : i32, i32
  }
  func.func @transform_4(%arg0: i32) -> (i32, i32) {
    %c0_i32 = arith.constant 0 : i32
    %c0_i32_0 = arith.constant 0 : i32
    %c0_i32_1 = arith.constant 0 : i32
    return %c0_i32, %c0_i32_0 : i32, i32
  }
  func.func @transform_5(%arg0: i32) -> (i32, i32) {
    %c0_i32 = arith.constant 0 : i32
    %c0_i32_0 = arith.constant 0 : i32
    %c0_i32_1 = arith.constant 0 : i32
    return %c0_i32, %c0_i32_0 : i32, i32
  }
  func.func @transform_6(%arg0: i32) -> (i32, i32) {
    %c0_i32 = arith.constant 0 : i32
    %c0_i32_0 = arith.constant 0 : i32
    %c0_i32_1 = arith.constant 0 : i32
    return %c0_i32, %c0_i32_0 : i32, i32
  }
  func.func @transform_7(%arg0: i32) -> (i32, i32) {
    %c0_i32 = arith.constant 0 : i32
    %c0_i32_0 = arith.constant 0 : i32
    %c0_i32_1 = arith.constant 0 : i32
    return %c0_i32, %c0_i32_0 : i32, i32
  }
  func.func @transform_8(%arg0: i32) -> (i32, i32) {
    %c0_i32 = arith.constant 0 : i32
    %c0_i32_0 = arith.constant 0 : i32
    %c0_i32_1 = arith.constant 0 : i32
    return %c0_i32, %c0_i32_0 : i32, i32
  }
  func.func @transform_9(%arg0: i32) -> (i32, i32) {
    %c0_i32 = arith.constant 0 : i32
    %c0_i32_0 = arith.constant 0 : i32
    %c0_i32_1 = arith.constant 0 : i32
    return %c0_i32, %c0_i32_0 : i32, i32
  }
  func.func @transform_10(%arg0: i32) -> (i32, i32) {
    %c0_i32 = arith.constant 0 : i32
    %c0_i32_0 = arith.constant 0 : i32
    %c0_i32_1 = arith.constant 0 : i32
    return %c0_i32, %c0_i32_0 : i32, i32
  }
  func.func @transform_11(%arg0: i32) -> (i32, i32) {
    %c0_i32 = arith.constant 0 : i32
    %c0_i32_0 = arith.constant 0 : i32
    %c0_i32_1 = arith.constant 0 : i32
    return %c0_i32, %c0_i32_0 : i32, i32
  }
  func.func @transform_12(%arg0: i32) -> (i32, i32) {
    %c0_i32 = arith.constant 0 : i32
    %c0_i32_0 = arith.constant 0 : i32
    %c0_i32_1 = arith.constant 0 : i32
    return %c0_i32, %c0_i32_0 : i32, i32
  }
  func.func @transform_13(%arg0: i32) -> (i32, i32) {
    %c0_i32 = arith.constant 0 : i32
    %c0_i32_0 = arith.constant 0 : i32
    %c0_i32_1 = arith.constant 0 : i32
    return %c0_i32, %c0_i32_0 : i32, i32
  }
  func.func @transform_14(%arg0: i32) -> (i32, i32) {
    %c0_i32 = arith.constant 0 : i32
    %c0_i32_0 = arith.constant 0 : i32
    %c0_i32_1 = arith.constant 0 : i32
    return %c0_i32, %c0_i32_0 : i32, i32
  }
  func.func @transform_15(%arg0: i32) -> (i32, i32) {
    %c0_i32 = arith.constant 0 : i32
    %c0_i32_0 = arith.constant 0 : i32
    %c0_i32_1 = arith.constant 0 : i32
    return %c0_i32, %c0_i32_0 : i32, i32
  }
  func.func @transform_16(%arg0: i32) -> (i32, i32) {
    %c0_i32 = arith.constant 0 : i32
    %c0_i32_0 = arith.constant 0 : i32
    %c0_i32_1 = arith.constant 0 : i32
    return %c0_i32, %c0_i32_0 : i32, i32
  }
  func.func @transform_17(%arg0: i32) -> (i32, i32) {
    %c0_i32 = arith.constant 0 : i32
    %c0_i32_0 = arith.constant 0 : i32
    %c0_i32_1 = arith.constant 0 : i32
    return %c0_i32, %c0_i32_0 : i32, i32
  }
  func.func @transform_18(%arg0: i32) -> (i32, i32) {
    %c0_i32 = arith.constant 0 : i32
    %c0_i32_0 = arith.constant 0 : i32
    %c0_i32_1 = arith.constant 0 : i32
    return %c0_i32, %c0_i32_0 : i32, i32
  }
  func.func @transform_19(%arg0: i32) -> (i32, i32) {
    %c0_i32 = arith.constant 0 : i32
    %c0_i32_0 = arith.constant 0 : i32
    %c0_i32_1 = arith.constant 0 : i32
    return %c0_i32, %c0_i32_0 : i32, i32
  }
  func.func @transform_20(%arg0: i32) -> (i32, i32) {
    %c0_i32 = arith.constant 0 : i32
    %c0_i32_0 = arith.constant 0 : i32
    %c0_i32_1 = arith.constant 0 : i32
    return %c0_i32, %c0_i32_0 : i32, i32
  }
  func.func @transform_21(%arg0: i32) -> (i32, i32) {
    %c0_i32 = arith.constant 0 : i32
    %c0_i32_0 = arith.constant 0 : i32
    %c0_i32_1 = arith.constant 0 : i32
    return %c0_i32, %c0_i32_0 : i32, i32
  }
  func.func @transform_22(%arg0: i32) -> (i32, i32) {
    %c0_i32 = arith.constant 0 : i32
    %c0_i32_0 = arith.constant 0 : i32
    %c0_i32_1 = arith.constant 0 : i32
    return %c0_i32, %c0_i32_0 : i32, i32
  }
  func.func @transform_23(%arg0: i32) -> (i32, i32) {
    %c0_i32 = arith.constant 0 : i32
    %c0_i32_0 = arith.constant 0 : i32
    %c0_i32_1 = arith.constant 0 : i32
    return %c0_i32, %c0_i32_0 : i32, i32
  }
  func.func @transform_24(%arg0: i32) -> (i32, i32) {
    %c0_i32 = arith.constant 0 : i32
    %c0_i32_0 = arith.constant 0 : i32
    %c0_i32_1 = arith.constant 0 : i32
    return %c0_i32, %c0_i32_0 : i32, i32
  }
  func.func @transform_25(%arg0: i32) -> (i32, i32) {
    %c0_i32 = arith.constant 0 : i32
    %c0_i32_0 = arith.constant 0 : i32
    %c0_i32_1 = arith.constant 0 : i32
    return %c0_i32, %c0_i32_0 : i32, i32
  }
  func.func @transform_26(%arg0: i32) -> (i32, i32, i32) {
    %c0_i32 = arith.constant 0 : i32
    %c0_i32_0 = arith.constant 0 : i32
    %c0_i32_1 = arith.constant 0 : i32
    return %arg0, %c0_i32, %c0_i32_0 : i32, i32, i32
  }
}

</mosaic_0001>

<bundles_post_ra>
// kernel: tpu_custom_call.1
= control target key start
LH: loop header
LB: loop body
LE: loop exit
PB: predicated region body
PF: predicated region fallthrough
CT: control target
= control target key end

     0   :  { %s6269_s0 = inlined_call_operand.vmem [shape: f32[2,8,32], index: 0, kind: input, shape index: {}]   ;;  %s6270_s1 = inlined_call_operand.vmem [shape: f32[2,16,64], index: 1, kind: input, shape index: {}]   ;;  %s6271_s2 = inlined_call_operand.hbm [shape: f32[1,32], index: 2, kind: input, shape index: {}]   ;;  %s6272_s3 = inlined_call_operand.hbm [shape: f32[1,32], index: 3, kind: input, shape index: {}]   ;;  %s6273_s4 = inlined_call_operand.vmem [shape: bf16[32,64], index: 4, kind: input, shape index: {}]   ;;  %s6274_s5 = inlined_call_operand.hbm [shape: f32[1,64], index: 5, kind: input, shape index: {}]   ;;  %s6275_s6 = inlined_call_operand.vmem [shape: bf16[64,32], index: 6, kind: input, shape index: {}]   ;;  %s6276_s7 = inlined_call_operand.hbm [shape: f32[1,32], index: 7, kind: input, shape index: {}]   ;;  %s6277_s8 = inlined_call_operand.vmem [shape: bf16[32,32], index: 8, kind: input, shape index: {}]   ;;  %s6278_s9 = inlined_call_operand.hbm [shape: f32[1,32], index: 9, kind: input, shape index: {}]   ;;  %s6279_s10 = inlined_call_operand.vmem [shape: bf16[32,32], index: 10, kind: input, shape index: {}]   ;;  %s6280_s11 = inlined_call_operand.hbm [shape: f32[1,32], index: 11, kind: input, shape index: {}]   ;;  %s6281_s12 = inlined_call_operand.vmem [shape: bf16[32,32], index: 12, kind: input, shape index: {}]   ;;  %s6282_s13 = inlined_call_operand.hbm [shape: f32[1,32], index: 13, kind: input, shape index: {}]   ;;  %s6283_s14 = inlined_call_operand.vmem [shape: bf16[32,32], index: 14, kind: input, shape index: {}]   ;;  %s6284_s15 = inlined_call_operand.hbm [shape: f32[1,32], index: 15, kind: input, shape index: {}]   ;;  %s6285_s16 = inlined_call_operand.vmem [shape: bf16[32,32], index: 16, kind: input, shape index: {}]   ;;  %s6286_s17 = inlined_call_operand.hbm [shape: f32[1,32], index: 17, kind: input, shape index: {}]   ;;  %s6287_s18 = inlined_call_operand.vmem [shape: bf16[64,32], index: 18, kind: input, shape index: {}]   ;;  %s6288_s19 = inlined_call_operand.vmem [shape: f32[1,32], index: 19, kind: input, shape index: {}]   ;;  %s6289_s20 = inlined_call_operand.vmem [shape: bf16[64,32], index: 20, kind: input, shape index: {}]   ;;  %s6290_s21 = inlined_call_operand.vmem [shape: f32[1,32], index: 21, kind: input, shape index: {}]   ;;  %s6291_s22 = inlined_call_operand.vmem [shape: bf16[32,32], index: 22, kind: input, shape index: {}]   ;;  %s6292_s23 = inlined_call_operand.vmem [shape: f32[1,32], index: 23, kind: input, shape index: {}]   ;;  %s6293_s24 = inlined_call_operand.vmem [shape: bf16[32,32], index: 24, kind: input, shape index: {}]   ;;  %s6294_s25 = inlined_call_operand.vmem [shape: f32[1,32], index: 25, kind: input, shape index: {}]   ;;  %s6295_s26 = inlined_call_operand.hbm [shape: f32[2,8,32], index: 26, kind: output, shape index: {}]  }
   0x1   :  { %6333 = sst [smem:[#allocation32_spill]] %s6269_s0 }
   0x2   :  { %6334 = sst [smem:[#allocation33_spill]] %s6270_s1 }
   0x3   :  { %6335 = sst [smem:[#allocation34_spill]] %s6271_s2 }
   0x4   :  { %6336 = sst [smem:[#allocation35_spill]] %s6272_s3 }
   0x5   :  { %6337 = sst [smem:[#allocation36_spill]] %s6273_s4 }
   0x6   :  { %6338 = sst [smem:[#allocation37_spill]] %s6274_s5 }
   0x7   :  { %6339 = sst [smem:[#allocation38_spill]] %s6275_s6 }
   0x8   :  { %6340 = sst [smem:[#allocation39_spill]] %s6276_s7 }
   0x9   :  { %6341 = sst [smem:[#allocation40_spill]] %s6277_s8 }
   0xa   :  { %6342 = sst [smem:[#allocation41_spill]] %s6278_s9 }
   0xb   :  { %6343 = sst [smem:[#allocation42_spill]] %s6279_s10 }
   0xc   :  { %6344 = sst [smem:[#allocation43_spill]] %s6280_s11 }
   0xd   :  { %6345 = sst [smem:[#allocation44_spill]] %s6284_s15 }
   0xe   :  { %6346 = sst [smem:[#allocation45_spill]] %s6293_s24 }
   0xf   :  { %6347 = sst [smem:[#allocation46_spill]] %s6294_s25 }
  0x10   :  { %6348 = sst [smem:[#allocation47_spill]] %s6295_s26 }
  0x11   :  { %31 = vsyncpa [#allocation3], 0 }
  0x12   :  { %32 = vsyncpa [#allocation6], 0 }
  0x13   :  { %33 = vsyncpa [#allocation9], 0 }
  0x14   :  { %34 = vsyncpa [#allocation12], 0 }
  0x15   :  { %35 = vsyncpa [#allocation15], 0 }
  0x16   :  { %36 = vsyncpa [#allocation4], 0 }
  0x17   :  { %38 = vsyncpa [#allocation4 + $0x1], 0  ;;  %s5393_s27 = smov 0   ;;  %s5395_s3 = smov 0  }
  0x18   :  { %s5397_s7 = smov 0   ;;  %s5399_s28 = smov 0  }
  0x19 LB: > { %6349 = sst [smem:[#allocation24_spill]] %s5223_s27  ;;  %s5414_s8 = sadd.s32 4294967295, %s5235_s28   ;;  %s5235_s28 = sphi %s5399_s28, %s6407_s28   ;;  %s5231_s7 = sphi %s5397_s7, %s6410_s7   ;;  %s5227_s3 = sphi %s5395_s3, %s6409_s3   ;;  %s5223_s27 = sphi %s5393_s27, %s6408_s27  }
  0x1a   : > { %6350 = sst [smem:[#allocation25_spill]] %s5227_s3  ;;  %s4312_s4 = sadd.s32 4294967294, %s5235_s28  }
  0x1b   : > { %6351 = sst [smem:[#allocation26_spill]] %s5231_s7  ;;  %s5418_s29 = sadd.s32 1, %s5235_s28  }
  0x1c   : > { %6352 = sst [smem:[#allocation27_spill]] %s5235_s28  ;;  %s607_s0 = sadd.s32 1, %s5231_s7 }
  0x1d   : > { %6353 = sst [smem:[#allocation28_spill]] %s5418_s29  ;;  %s604_s9 = ssub.s32 %s5235_s28, %s5418_s29 }
  0x1e   : > { %p617_p0 = scmp.ne.s32.totalorder %s5231_s7, %s5227_s3  ;;  %p605_p1 = scmp.eq.s32.totalorder %s604_s9, 0 }
  0x1f   : > { %p618_p2 = scmp.eq.s32.totalorder %s5414_s8, 1  ;;  %p623_p3 = scmp.ne.s32.totalorder %s5227_s3, %s5223_s27 }
  0x20   : > { %p624_p4 = scmp.eq.s32.totalorder %s4312_s4, 1  ;;  %p4313_p7 = scmp.ge.s32.totalorder %s5235_s28, 1 }
  0x21   : > { %s5429_s30 = scalar_select %p605_p1, %s5231_s7, %s607_s0  }
  0x22   : > { %p5431_p5 = por %p618_p2, %p617_p0  ;;  %p5435_p6 = por %p624_p4, %p623_p3 }
  0x23   : > { %6354 = sst [smem:[#allocation29_spill]] %s5429_s30  ;;  %p631_p8 = scmp.lt.s32.totalorder %s5235_s28, 3 }
  0x24   : > { %s6355_s2 = scalar_select %p5431_p5, 1, 0 }
  0x25   : > { %s6357_s5 = scalar_select %p5435_p6, 1, 0 }
  0x26   : > { %6356 = sst [smem:[#allocation30_spill]] %s6355_s2  ;;  %p6314_p9 = scmp.eq.s32.totalorder %s5414_s8, 0 }
  0x27   : > { %6358 = sst [smem:[#allocation31_spill]] %s6357_s5  ;;  %p5442_p10 = pnand %p4313_p7, %p631_p8 }
  0x28   : > { %s5237_s6 = smov [#allocation5]   ;;  %s5238_s4 = smov [#allocation8]  }
  0x29   : > { %s6359_s10 = scalar_select %p5442_p10, 1, 0 }
  0x2a   : > { %s655_s1 = sshll.u32 %s5237_s6, 4  ;;  %p4728_p11 = pneg %p5442_p10  ;;  %s656_s1 = int_to_ptr.vmem [resolvable:$true] %s655_s1 }
  0x2b   : > { %s683_s0 = sshll.u32 %s5238_s4, 4  ;;  %s5239_s30 = smov [#allocation11]   ;;  %s5454_s0 = int_to_ptr.vmem [resolvable:$true] %s683_s0 }
  0x2c   : > { %p5450_p12 = pnand %p6314_p9, %p4728_p11  ;;  %s711_s7 = sshll.u32 %s5239_s30, 4  ;;  %s5456_s7 = int_to_ptr.vmem [resolvable:$true] %s711_s7 }
  0x2d   : > { %s6361_s6 = sld [smem:[#allocation35_spill]] }
  0x2e   : > { %p5466_p0 = pneg %p5450_p12 }
  0x33   : > { %s4901_s27 = scalar_lea.hbm %s6361_s6, 16 }
  0x34   : > { %p4902_p13 = scmp.ne.s32.totalorder %s6361_s6, %s4901_s27  ;;  %p4908_p3 = scmp.lt.u32.totalorder %s4901_s27, %s6361_s6 }
  0x36   : > { %p4904_p1 = pnand %p5466_p0, %p4902_p13 }
  0x38   : > { %p4905_p2 = pneg %p4904_p1 }
  0x3a   : > { %p4910_p4 = pnand %p4908_p3, %p4905_p2 }
  0x3c   : > { %4913 = shalt.err (!%p4910_p4)
}
  0x3d   : > { %s4914_s29 = scalar_lea.vmem %s656_s1, 16  ;;  %s4921_s26 = scalar_lea.vmem %s656_s1, 32 }
  0x3e   : > { %p4915_p7 = scmp.ne.s32.totalorder %s656_s1, %s4914_s29  ;;  %p4922_p9 = scmp.lt.s32.totalorder %s656_s1, %s656_s1 }
  0x3f   : > { %p4923_p6 = scmp.lt.s32.totalorder %s4921_s26, %s4914_s29 }
  0x40   : > { %p4917_p8 = pnand %p4915_p7, %p5466_p0 }
  0x41   : > { %p4924_p5 = por %p4923_p6, %p4922_p9 }
  0x42   : > { %p4918_p11 = pneg %p4917_p8 }
  0x44   : > { %p4925_p10 = pnand %p4924_p5, %p4918_p11 }
  0x46   : > { %4928 = shalt.err (!%p4925_p10)
}
  0x47   : > { %4734 = dma.hbm_to_vmem [thread:$0]  (!%p5450_p12), %s6361_s6, 16, %s656_s1, [#allocation6]  }
  0x48   : > { %s6363_s30 = sld [smem:[#allocation39_spill]] }
  0x4e   : > { %s4929_s3 = scalar_lea.hbm %s6363_s30, 16 }
  0x4f   : > { %p4930_p13 = scmp.ne.s32.totalorder %s6363_s30, %s4929_s3  ;;  %p4936_p5 = scmp.lt.u32.totalorder %s4929_s3, %s6363_s30 }
  0x51   : > { %p4932_p1 = pnand %p4930_p13, %p5466_p0 }
  0x53   : > { %p4933_p6 = pneg %p4932_p1 }
  0x55   : > { %p4938_p9 = pnand %p4936_p5, %p4933_p6 }
  0x57   : > { %4941 = shalt.err (!%p4938_p9)
}
  0x58   : > { %s4942_s1 = scalar_lea.vmem %s5454_s0, 16  ;;  %s4949_s24 = scalar_lea.vmem %s5454_s0, 32 }
  0x59   : > { %p4943_p10 = scmp.ne.s32.totalorder %s5454_s0, %s4942_s1  ;;  %p4950_p4 = scmp.lt.s32.totalorder %s5454_s0, %s5454_s0 }
  0x5a   : > { %p4951_p7 = scmp.lt.s32.totalorder %s4949_s24, %s4942_s1 }
  0x5b   : > { %p4945_p2 = pnand %p4943_p10, %p5466_p0 }
  0x5c   : > { %p4952_p8 = por %p4951_p7, %p4950_p4 }
  0x5d   : > { %p4946_p3 = pneg %p4945_p2 }
  0x5f   : > { %p4953_p11 = pnand %p4952_p8, %p4946_p3 }
  0x61   : > { %4956 = shalt.err (!%p4953_p11)
}
  0x62   : > { %4740 = dma.hbm_to_vmem [thread:$0]  (!%p5450_p12), %s6363_s30, 16, %s5454_s0, [#allocation9]  }
  0x63   : > { %s6364_s11 = sld [smem:[#allocation43_spill]] }
  0x69   : > { %s4957_s27 = scalar_lea.hbm %s6364_s11, 16 }
  0x6a   : > { %p4958_p13 = scmp.ne.s32.totalorder %s6364_s11, %s4957_s27  ;;  %p4964_p5 = scmp.lt.u32.totalorder %s4957_s27, %s6364_s11 }
  0x6c   : > { %p4960_p1 = pnand %p4958_p13, %p5466_p0 }
  0x6e   : > { %p4961_p6 = pneg %p4960_p1 }
  0x70   : > { %p4966_p9 = pnand %p4964_p5, %p4961_p6 }
  0x72   : > { %4969 = shalt.err (!%p4966_p9)
}
  0x73   : > { %s4970_s0 = scalar_lea.vmem %s5456_s7, 16  ;;  %s4977_s24 = scalar_lea.vmem %s5456_s7, 32 }
  0x74   : > { %p4971_p10 = scmp.ne.s32.totalorder %s5456_s7, %s4970_s0  ;;  %p4978_p4 = scmp.lt.s32.totalorder %s5456_s7, %s5456_s7 }
  0x75   : > { %p4979_p7 = scmp.lt.s32.totalorder %s4977_s24, %s4970_s0 }
  0x76   : > { %p4973_p2 = pnand %p4971_p10, %p5466_p0 }
  0x77   : > { %p4980_p8 = por %p4979_p7, %p4978_p4 }
  0x78   : > { %p4974_p3 = pneg %p4973_p2 }
  0x7a   : > { %p4981_p11 = pnand %p4980_p8, %p4974_p3 }
  0x7c   : > { %4984 = shalt.err (!%p4981_p11)
}
  0x7d   : > { %4746 = dma.hbm_to_vmem [thread:$0]  (!%p5450_p12), %s6364_s11, 16, %s5456_s7, [#allocation12]  }
  0x7e   : > { %s5240_s28 = smov [#allocation14]   ;;  %s5241_s27 = smov [#allocation2]  }
  0x7f   : > { %s739_s5 = sshll.u32 %s5240_s28, 4  ;;  %s644_s2 = sshll.u32 %s5241_s27, 4  ;;  %s740_s5 = int_to_ptr.vmem [resolvable:$true] %s739_s5  ;;  %s645_s2 = int_to_ptr.vmem [resolvable:$true] %s644_s2 }
  0x80   : > { %s6365_s15 = sld [smem:[#allocation44_spill]] }
  0x86   : > { %s4985_s1 = scalar_lea.hbm %s6365_s15, 16 }
  0x87   : > { %p4986_p13 = scmp.ne.s32.totalorder %s6365_s15, %s4985_s1  ;;  %p4992_p5 = scmp.lt.u32.totalorder %s4985_s1, %s6365_s15 }
  0x89   : > { %p4988_p1 = pnand %p4986_p13, %p5466_p0 }
  0x8b   : > { %p4989_p6 = pneg %p4988_p1 }
  0x8d   : > { %p4994_p9 = pnand %p4992_p5, %p4989_p6 }
  0x8f   : > { %4997 = shalt.err (!%p4994_p9)
}
  0x90   : > { %s4998_s7 = scalar_lea.vmem %s740_s5, 16  ;;  %s5005_s3 = scalar_lea.vmem %s740_s5, 32 }
  0x91   : > { %p4999_p10 = scmp.ne.s32.totalorder %s740_s5, %s4998_s7  ;;  %p5006_p4 = scmp.lt.s32.totalorder %s740_s5, %s740_s5 }
  0x92   : > { %p5007_p7 = scmp.lt.s32.totalorder %s5005_s3, %s4998_s7 }
  0x93   : > { %p5001_p2 = pnand %p4999_p10, %p5466_p0 }
  0x94   : > { %p5008_p8 = por %p5007_p7, %p5006_p4 }
  0x95   : > { %p5002_p3 = pneg %p5001_p2 }
  0x97   : > { %p5009_p11 = pnand %p5008_p8, %p5002_p3 }
  0x99   : > { %5012 = shalt.err (!%p5009_p11)
}
  0x9a   : > { %4752 = dma.hbm_to_vmem [thread:$0]  (!%p5450_p12), %s6365_s15, 16, %s740_s5, [#allocation15]  }
  0x9b   : > { %s6366_s26 = sld [smem:[#allocation34_spill]] }
  0xa1   : > { %s5013_s1 = scalar_lea.hbm %s6366_s26, 16 }
  0xa2   : > { %p5014_p13 = scmp.ne.s32.totalorder %s6366_s26, %s5013_s1  ;;  %p5020_p5 = scmp.lt.u32.totalorder %s5013_s1, %s6366_s26 }
  0xa4   : > { %p5016_p1 = pnand %p5014_p13, %p5466_p0 }
  0xa6   : > { %p5017_p6 = pneg %p5016_p1 }
  0xa8   : > { %p5022_p9 = pnand %p5020_p5, %p5017_p6 }
  0xaa   : > { %5025 = shalt.err (!%p5022_p9)
}
  0xab   : > { %s5026_s3 = scalar_lea.vmem %s645_s2, 16  ;;  %s5033_s5 = scalar_lea.vmem %s645_s2, 32 }
  0xac   : > { %p5027_p10 = scmp.ne.s32.totalorder %s645_s2, %s5026_s3  ;;  %p5034_p4 = scmp.lt.s32.totalorder %s645_s2, %s645_s2 }
  0xad   : > { %p5035_p7 = scmp.lt.s32.totalorder %s5033_s5, %s5026_s3 }
  0xae   : > { %p5029_p2 = pnand %p5027_p10, %p5466_p0 }
  0xaf   : > { %p5036_p8 = por %p5035_p7, %p5034_p4 }
  0xb0   : > { %p5030_p3 = pneg %p5029_p2 }
  0xb2   : > { %p5037_p11 = pnand %p5036_p8, %p5030_p3 }
  0xb4   : > { %5040 = shalt.err (!%p5037_p11)
}
  0xb5   : > { %4731 = dma.hbm_to_vmem [thread:$0]  (!%p5450_p12), %s6366_s26, 16, %s645_s2, [#allocation3]  }
  0xb6   : > { %s5242_s6 = smov [#allocation7]   ;;  %s5243_s1 = smov [#allocation10]  }
  0xb7   : > { %s669_s29 = sshll.u32 %s5242_s6, 4  ;;  %s697_s0 = sshll.u32 %s5243_s1, 4  ;;  %s670_s29 = int_to_ptr.vmem [resolvable:$true] %s669_s29  ;;  %s698_s0 = int_to_ptr.vmem [resolvable:$true] %s697_s0 }
  0xb8   : > { %s6367_s7 = sld [smem:[#allocation37_spill]] }
  0xbe   : > { %s6368_s11 = smov %s6367_s7  ;;  %s5041_s15 = scalar_lea.hbm %s6367_s7, 16 }
  0xbf   : > { %p5042_p13 = scmp.ne.s32.totalorder %s6368_s11, %s5041_s15  ;;  %p5048_p5 = scmp.lt.u32.totalorder %s5041_s15, %s6368_s11 }
  0xc1   : > { %p5044_p1 = pnand %p5042_p13, %p5466_p0 }
  0xc3   : > { %p5045_p6 = pneg %p5044_p1 }
  0xc5   : > { %p5050_p9 = pnand %p5048_p5, %p5045_p6 }
  0xc7   : > { %5053 = shalt.err (!%p5050_p9)
}
  0xc8   : > { %s5054_s2 = scalar_lea.vmem %s670_s29, 16  ;;  %s5061_s27 = scalar_lea.vmem %s670_s29, 32 }
  0xc9   : > { %p5055_p10 = scmp.ne.s32.totalorder %s670_s29, %s5054_s2  ;;  %p5062_p4 = scmp.lt.s32.totalorder %s670_s29, %s670_s29 }
  0xca   : > { %p5063_p7 = scmp.lt.s32.totalorder %s5061_s27, %s5054_s2 }
  0xcb   : > { %p5057_p2 = pnand %p5055_p10, %p5466_p0 }
  0xcc   : > { %p5064_p8 = por %p5063_p7, %p5062_p4 }
  0xcd   : > { %p5058_p3 = pneg %p5057_p2 }
  0xcf   : > { %p5065_p11 = pnand %p5064_p8, %p5058_p3 }
  0xd1   : > { %5068 = shalt.err (!%p5065_p11)
}
  0xd2   : > { %4737 = dma.hbm_to_vmem [thread:$0]  (!%p5450_p12), %s6368_s11, 16, %s670_s29, [#allocation6]  }
  0xd3   : > { %s6369_s24 = sld [smem:[#allocation41_spill]] }
  0xd9   : > { %s5069_s25 = scalar_lea.hbm %s6369_s24, 16 }
  0xda   : > { %p5070_p13 = scmp.ne.s32.totalorder %s6369_s24, %s5069_s25  ;;  %p5076_p5 = scmp.lt.u32.totalorder %s5069_s25, %s6369_s24 }
  0xdc   : > { %p5072_p1 = pnand %p5070_p13, %p5466_p0 }
  0xde   : > { %p5073_p6 = pneg %p5072_p1 }
  0xe0   : > { %p5078_p9 = pnand %p5076_p5, %p5073_p6 }
  0xe2   : > { %5081 = shalt.err (!%p5078_p9)
}
  0xe3   : > { %s5082_s2 = scalar_lea.vmem %s698_s0, 16  ;;  %s5089_s29 = scalar_lea.vmem %s698_s0, 32 }
  0xe4   : > { %p5083_p10 = scmp.ne.s32.totalorder %s698_s0, %s5082_s2  ;;  %p5090_p4 = scmp.lt.s32.totalorder %s698_s0, %s698_s0 }
  0xe5   : > { %p5091_p7 = scmp.lt.s32.totalorder %s5089_s29, %s5082_s2 }
  0xe6   : > { %p5085_p2 = pnand %p5083_p10, %p5466_p0 }
  0xe7   : > { %p5092_p8 = por %p5091_p7, %p5090_p4 }
  0xe8   : > { %p5086_p3 = pneg %p5085_p2 }
  0xea   : > { %p5093_p11 = pnand %p5092_p8, %p5086_p3 }
  0xec   : > { %5096 = shalt.err (!%p5093_p11)
}
  0xed   : > { %4743 = dma.hbm_to_vmem [thread:$0]  (!%p5450_p12), %s6369_s24, 16, %s698_s0, [#allocation9]  }
  0xee   : > { %s5244_s1 = smov [#allocation13]   ;;  %s5245_s30 = smov [#allocation16]  }
  0xef   : > { %s725_s15 = sshll.u32 %s5244_s1, 4  ;;  %s753_s25 = sshll.u32 %s5245_s30, 4  ;;  %s726_s15 = int_to_ptr.vmem [resolvable:$true] %s725_s15  ;;  %s754_s25 = int_to_ptr.vmem [resolvable:$true] %s753_s25 }
  0xf0   : > { %s5097_s5 = scalar_lea.hbm %s6282_s13, 16 }
  0xf1   : > { %p5098_p13 = scmp.ne.s32.totalorder %s6282_s13, %s5097_s5  ;;  %p5104_p5 = scmp.lt.u32.totalorder %s5097_s5, %s6282_s13 }
  0xf3   : > { %p5100_p1 = pnand %p5098_p13, %p5466_p0 }
  0xf5   : > { %p5101_p6 = pneg %p5100_p1 }
  0xf7   : > { %p5106_p9 = pnand %p5104_p5, %p5101_p6 }
  0xf9   : > { %5109 = shalt.err (!%p5106_p9)
}
  0xfa   : > { %s5110_s0 = scalar_lea.vmem %s726_s15, 16  ;;  %s5117_s6 = scalar_lea.vmem %s726_s15, 32 }
  0xfb   : > { %p5111_p10 = scmp.ne.s32.totalorder %s726_s15, %s5110_s0  ;;  %p5118_p4 = scmp.lt.s32.totalorder %s726_s15, %s726_s15 }
  0xfc   : > { %p5119_p7 = scmp.lt.s32.totalorder %s5117_s6, %s5110_s0 }
  0xfd   : > { %p5113_p2 = pnand %p5111_p10, %p5466_p0 }
  0xfe   : > { %p5120_p8 = por %p5119_p7, %p5118_p4 }
  0xff   : > { %p5114_p3 = pneg %p5113_p2 }
 0x101   : > { %p5121_p11 = pnand %p5120_p8, %p5114_p3 }
 0x103   : > { %5124 = shalt.err (!%p5121_p11)
}
 0x104   : > { %4749 = dma.hbm_to_vmem [thread:$0]  (!%p5450_p12), %s6282_s13, 16, %s726_s15, [#allocation12]  }
 0x105   : > { %s5125_s5 = scalar_lea.hbm %s6286_s17, 16 }
 0x106   : > { %p5126_p13 = scmp.ne.s32.totalorder %s6286_s17, %s5125_s5  ;;  %p5132_p5 = scmp.lt.u32.totalorder %s5125_s5, %s6286_s17 }
 0x108   : > { %p5128_p1 = pnand %p5126_p13, %p5466_p0 }
 0x10a   : > { %p5129_p6 = pneg %p5128_p1 }
 0x10c   : > { %p5134_p9 = pnand %p5132_p5, %p5129_p6 }
 0x10e   : > { %5137 = shalt.err (!%p5134_p9)
}
 0x10f   : > { %s5138_s0 = scalar_lea.vmem %s754_s25, 16  ;;  %s5145_s15 = scalar_lea.vmem %s754_s25, 32 }
 0x110   : > { %p5139_p10 = scmp.ne.s32.totalorder %s754_s25, %s5138_s0  ;;  %p5146_p4 = scmp.lt.s32.totalorder %s754_s25, %s754_s25 }
 0x111   : > { %p5147_p7 = scmp.lt.s32.totalorder %s5145_s15, %s5138_s0 }
 0x112   : > { %p5141_p2 = pnand %p5139_p10, %p5466_p0 }
 0x113   : > { %p5148_p8 = por %p5147_p7, %p5146_p4 }
 0x114   : > { %p5142_p3 = pneg %p5141_p2 }
 0x116   : > { %p5149_p11 = pnand %p5148_p8, %p5142_p3 }
 0x118   : > { %5152 = shalt.err (!%p5149_p11)
}
 0x119   : > { %4755 = dma.hbm_to_vmem [thread:$0]  (!%p5450_p12), %s6286_s17, 16, %s754_s25, [#allocation15]  }
 0x11a   : > { %p6370_p13 = scmp.ne.s32.totalorder %s6359_s10, 0 }
 0x11b   : > { %p6371_p1 = scmp.eq.s32.totalorder (!%p6370_p13), %s5414_s8, 0 }
 0x11c   : > { %805 = sbr.rel (%p6370_p13) target bundleno = 5243 (0x147b), region = 124 }
 0x123   : > { %5198 = dma.done.wait (%p6371_p1), [#allocation3], 16   ;;  %p6372_p0 = pmov %p6371_p1 }
 0x125   : > { %5200 = vsyncadd (%p6372_p0), [#allocation3], 4294967280  ;;  %p6373_p6 = pmov %p6372_p0 }
 0x126   : > { %p6374_p5 = pmov %p6372_p0 }
 0x127   : > { %5202 = dma.done.wait (%p6373_p6), [#allocation6], 32  }
 0x128   : > { %5204 = vsyncadd (%p6374_p5), [#allocation6], 4294967264  ;;  %p6375_p9 = pmov %p6372_p0 }
 0x129   : > { %p6376_p12 = pmov %p6372_p0 }
 0x12a   : > { %5206 = dma.done.wait (%p6375_p9), [#allocation9], 32  }
 0x12b   : > { %5208 = vsyncadd (%p6376_p12), [#allocation9], 4294967264  ;;  %p6377_p10 = pmov %p6372_p0 }
 0x12c   : > { %p6378_p2 = pmov %p6372_p0 }
 0x12d   : > { %5210 = dma.done.wait (%p6377_p10), [#allocation12], 32  }
 0x12e   : > { %5212 = vsyncadd (%p6378_p2), [#allocation12], 4294967264  ;;  %p6379_p3 = pmov %p6372_p0 }
 0x12f   : > { %p6380_p4 = pmov %p6372_p0 }
 0x130   : > { %5214 = dma.done.wait (%p6379_p3), [#allocation15], 32  }
 0x131   : > { %5216 = vsyncadd (%p6380_p4), [#allocation15], 4294967264  ;;  %p911_p7 = scmp.lt.s32.totalorder %s5414_s8, 1  ;;  %v5246_v0 = vmov 0.0   ;;  %vm5247_vm0 = vmmov 0   ;;  %s6381_s30 = sld [smem:[#allocation32_spill]] }
 0x132   : > { %4494 = vmatprep.subr.bf16.mxu0 %v5246_v0  ;;  %4498 = vmatprep.mubr.msk.bf16.mxu0 %vm5247_vm0, %v5246_v0  ;;  %s6382_s28 = sld [smem:[#allocation36_spill]]  ;;  %s6384_s6 = sld [smem:[#allocation38_spill]]  ;;  %vm951_vm1 = vcmask 261120   ;;  %v4338_v9 = vld [vmem:[#allocation7] ss:$0 sm:$0xff]  ;;  %vm1036_vm2 = vcmask 523264  }
 0x133   : > { %s5665_s10 = scalar_select %p911_p7, %s5414_s8, 1  ;;  %4502 = vmatprep.subr.bf16.mxu1 %v5246_v0  ;;  %4510 = vmatprep.mubr.msk.bf16.mxu1 %vm5247_vm0, %v5246_v0  ;;  %v4342_v17 = vld [vmem:[#allocation8] ss:$0 sm:$0xff]  ;;  %v4840_v33 = vld [vmem:[%s6281_s12 + $0x8] sm:$0xff]   ;;  %v5722_v38 = vld [vmem:[#allocation2] ss:$0 sm:$0xff] }
 0x134   : > { %v4838_v31 = vld [vmem:[%s6281_s12] sm:$0xff]   ;;  %v4354_v54 = vld [vmem:[#allocation11] ss:$0 sm:$0xff]  ;;  %v4350_v61 = vld [vmem:[#allocation10] ss:$0 sm:$0xff]  ;;  %s6324_s27 = smov 104  }
 0x135   : > { %s4335_s9 = sshll.u32 %s5665_s10, 3  ;;  %v5724_v40 = vld [vmem:[#allocation5] ss:$0 sm:$0xff]  ;;  %s6326_s0 = smov 120   ;;  %vm1809_vm3 = vcmask 64512   ;;  %vm2049_vm4 = vcmask 1043456  }
 0x136   : > { %s6328_s15 = smov 112   ;;  %s6321_s3 = smov 24   ;;  %vm2380_vm5 = vcmask 130048   ;;  %vm2382_vm6 = vcmask 195584  }
 0x137   : > { %s914_s7 = scalar_lea.vmem %s6381_s30, %s4335_s9  ;;  %s6323_s30 = smov 16  }
 0x138   : > { %s6383_s2 = smov %s6382_s28  ;;  %v4831_v1 = vld [vmem:[%s6382_s28] sm:$0xff]   ;;  %v4834_v5 = vld [vmem:[%s6384_s6 + $0x8] sm:$0xff]   ;;  %v4835_v7 = vld [vmem:[%s6384_s6 + $0x10] sm:$0xff]   ;;  %s6385_s28 = sld [smem:[#allocation40_spill]] }
 0x139   : > { %v4832_v2 = vld [vmem:[%s6383_s2 + $0x8] sm:$0xff]   ;;  %4495 = vmatpush3.bf16.msra.mxu0 %v4831_v1  ;;  %v921_v3 = vld [vmem:[%s914_s7] sm:$0xff]  ;;  %v4836_v8 = vld [vmem:[%s6384_s6 + $0x18] sm:$0xff]   ;;  %s6387_s7 = sld [smem:[#allocation42_spill]]  ;;  %v5251_v1 = vmov 1983009808  }
 0x13a   : > { %4496 = vmatprep.subr.bf16.mxu0 %v5246_v0  ;;  %v4833_v4 = vld [vmem:[%s6384_s6] sm:$0xff]   ;;  %v927_v6 = vpack.c.bf16 %v921_v3, %v921_v3  ;;  %s4422_s25 = sshll.u32 %s5665_s10, 4  ;;  %s6391_s4 = smov 120  }
 0x13b   : > { %4503 = vmatpush3.bf16.msra.mxu1 %v4833_v4  ;;  %v5252_v4 = vmov 1934713408   ;;  %s6392_s9 = smov 104   ;;  %s6393_s1 = smov 16  }
 0x13c   : > { %4504 = vmatprep.subr.bf16.mxu1 %v5246_v0  ;;  %s6394_s10 = smov 8  }
 0x13d   : > { %4497 = vmatpush3.bf16.msra.mxu0 %v4832_v2  ;;  %v1311_v2 = vunpack.c.l.s4 %v5251_v1 }
 0x13e   : > { %4514 = vmatprep.subr.bf16.mxu0 %v5246_v0  ;;  %s6386_s29 = smov %s6385_s28  ;;  %v4837_v30 = vld [vmem:[%s6385_s28] sm:$0xff]  }
 0x13f   : > { %4505 = vmatpush3.bf16.msra.mxu1 %v4834_v5  ;;  %v4839_v32 = vld [vmem:[%s6386_s29 + $0x8] sm:$0xff]   ;;  %s6388_s5 = smov %s6387_s7  ;;  %v4841_v43 = vld [vmem:[%s6387_s7] sm:$0xff]   ;;  %v1328_v5 = vunpack.c.l.s4 %v5252_v4  ;;  %s6322_s7 = smov 8  }
 0x140   : > { %4499 = vmatmul.mubr.msk.bf16.vlgmr.msra.gmra.mrb[0].mxu0 %vm951_vm1, %v927_v6  ;;  %4506 = vmatprep.subr.bf16.mxu1 %v5246_v0  ;;  %v4842_v45 = vld [vmem:[%s6388_s5 + $0x8] sm:$0xff]   ;;  %v1312_v6 = vunpack.c.0.s8 %v1311_v2 }
 0x141   : > { %4518 = vmatprep.mubr.msk.bf16.mxu0 %vm5247_vm0, %v5246_v0  ;;  %4515 = vmatpush3.bf16.msra.mxu0 %v4837_v30 }
 0x142   : > { %4516 = vmatprep.subr.bf16.mxu0 %v5246_v0 }
 0x143   : > { %4507 = vmatpush3.bf16.msra.mxu1 %v4835_v7 }
 0x144   : > { %4508 = vmatprep.subr.bf16.mxu1 %v5246_v0 }
 0x145   : > { %4517 = vmatpush3.bf16.msra.mxu0 %v4839_v32 }
 0x146   : > { %4522 = vmatprep.subr.bf16.mxu0 %v5246_v0 }
 0x147   : > { %4509 = vmatpush3.bf16.msra.mxu1 %v4836_v8  ;;  %v1329_v8 = vunpack.c.0.s8 %v1328_v5 }
 0x148   : > { %4530 = vmatprep.subr.bf16.mxu1 %v5246_v0 }
 0x213   : > { %v989_v10 = vpop.f32.mrb[0].mxu0 }
 0x214   : > { %v990_v11 = vadd.f32 %v4338_v9, %v989_v10  ;;  %v4500_v12 = vpop.f32.mrb[1].mxu0 }
 0x215   : > { %v992_v13 = vpop.f32.mrb[2].mxu0 }
 0x216   : > { %v995_v14 = vmax.f32 %v990_v11, 0.0  ;;  %v4501_v15 = vpop.f32.mrb[3].mxu0 }
 0x218   : > { %v996_v16 = vpack.c.bf16 %v995_v14, %v995_v14 }
 0x21a   : > { %4511 = vmatmul.mubr.msk.bf16.vlgmr.msra.gmra.mrb[0].mxu1 %vm1036_vm2, %v996_v16 }
 0x21b   : > { %4534 = vmatprep.mubr.msk.bf16.mxu1 %vm5247_vm0, %v5246_v0  ;;  %4531 = vmatpush3.bf16.msra.mxu1 %v4838_v31 }
 0x21c   : > { %4532 = vmatprep.subr.bf16.mxu1 %v5246_v0 }
 0x21f   : > { %4533 = vmatpush3.bf16.msra.mxu1 %v4840_v33 }
 0x220   : > { %4544 = vmatprep.subr.bf16.mxu1 %v5246_v0 }
 0x2ed   : > { %v1074_v18 = vpop.f32.mrb[0].mxu1 }
 0x2ee   : > { %v1075_v19 = vadd.f32 %v4342_v17, %v1074_v18  ;;  %v4512_v20 = vpop.f32.mrb[1].mxu1 }
 0x2ef   : > { %v1077_v21 = vpop.f32.mrb[2].mxu1 }
 0x2f0   : > { %v4513_v22 = vpop.f32.mrb[3].mxu1  ;;  %v1080_v23 = vadd.f32 %v1075_v19, %v921_v3  ;;  %v1313_v3 = vlaneseq }
 0x2f1   : > { %v5253_v22 = vmov 0  }
 0x2f2   : > { %v1081_v24 = vsel %vm951_vm1, %v1080_v23, 0.0  ;;  %v1314_v7 = vshrl.u32 %v1313_v3, 7 }
 0x2f3   : > { %1082 = vadd.xlane.f32.xlu0 %v1081_v24 }
 0x2f4   : > { %v5757_v9 = vsub.s32 %v1312_v6, %v1314_v7  ;;  %v5760_v13 = vsub.s32 %v1329_v8, %v1314_v7 }
 0x380   : > { %v1083_v25 = vpop.xlane.xlu0 %1082 }
 0x381   : > { %v1085_v26 = vmul.f32 0.03125, %v1083_v25 }
 0x383   : > { %v1086_v27 = vsub.f32 %v1080_v23, %v1085_v26 }
 0x385   : > { %v1087_v28 = vmul.f32 %v1086_v27, %v1086_v27 }
 0x387   : > { %v1088_v29 = vsel %vm951_vm1, %v1087_v28, 0.0 }
 0x388   : > { %1089 = vadd.xlane.f32.xlu0 %v1088_v29 }
 0x415   : > { %v1090_v34 = vpop.xlane.xlu0 %1089 }
 0x416   : > { %v1091_v35 = vmul.f32 0.03125, %v1090_v34 }
 0x418   : > { %v1092_v36 = vadd.f32 1e-05, %v1091_v35 }
 0x41a   : > { %4859 = vrsqrt.f32 %v1092_v36 }
 0x424   : > { %v4860_v37 = vpop.eup %4859 }
 0x425   : > { %v1094_v39 = vmul.f32 %v4860_v37, %v1086_v27 }
 0x427   : > { %v1101_v41 = vmul.f32 %v5722_v38, %v1094_v39 }
 0x429   : > { %v5728_v42 = vadd.f32 %v5724_v40, %v1101_v41 }
 0x42b   : > { %v1109_v44 = vpack.c.bf16 %v5728_v42, %v5728_v42 }
 0x42d   : > { %4519 = vmatmul.mubr.msk.bf16.vlgmr.msra.gmra.mrb[4].mxu0 %vm951_vm1, %v1109_v44  ;;  %4535 = vmatmul.mubr.msk.bf16.vlgmr.msra.gmra.mrb[4].mxu1 %vm951_vm1, %v1109_v44 }
 0x42e   : > { %4523 = vmatpush3.bf16.msra.mxu0 %v4841_v43  ;;  %4526 = vmatprep.mubr.msk.bf16.mxu0 %vm5247_vm0, %v5246_v0 }
 0x42f   : > { %4524 = vmatprep.subr.bf16.mxu0 %v5246_v0  ;;  %4546 = vmatprep.mubr.msk.bf16.mxu1 %vm5247_vm0, %v5246_v0 }
 0x432   : > { %4525 = vmatpush3.bf16.msra.mxu0 %v4842_v45 }
 0x433   : > { %4538 = vmatprep.subr.bf16.mxu0 %v5246_v0 }
 0x435   : > { %4527 = vmatmul.mubr.msk.bf16.vlgmr.msra.gmra.mrb[8].mxu0 %vm951_vm1, %v1109_v44 }
 0x436   : > { %4540 = vmatprep.mubr.msk.bf16.mxu0 %vm5247_vm0, %v5246_v0 }
 0x500   : > { %v1170_v46 = vpop.f32.mrb[4].mxu0  ;;  %v5749_v47 = vpop.f32.mrb[4].mxu1 }
 0x501   : > { %v4520_v48 = vpop.f32.mrb[5].mxu0  ;;  %v4536_v49 = vpop.f32.mrb[5].mxu1  ;;  %v1171_v62 = vadd.f32 %v4350_v61, %v1170_v46 }
 0x502   : > { %v1173_v50 = vpop.f32.mrb[6].mxu0  ;;  %v1299_v51 = vpop.f32.mrb[6].mxu1 }
 0x503   : > { %v4521_v52 = vpop.f32.mrb[7].mxu0  ;;  %v4537_v53 = vpop.f32.mrb[7].mxu1  ;;  %v1302_v63 = vpack.c.bf16 %v1171_v62, %v1171_v62 }
 0x505   : > { %v1316_v33 = vrot.slane %v1302_v63, %v5757_v9 }
 0x508   : > { %v1233_v55 = vpop.f32.mrb[8].mxu0 }
 0x509   : > { %v1234_v56 = vadd.f32 %v4354_v54, %v1233_v55  ;;  %v4528_v57 = vpop.f32.mrb[9].mxu0 }
 0x50a   : > { %v1236_v58 = vpop.f32.mrb[10].mxu0 }
 0x50b   : > { %v1471_v59 = vpack.c.bf16 %v1234_v56, %v1234_v56  ;;  %v4529_v60 = vpop.f32.mrb[11].mxu0 }
 0x50d   : > { %1477 = vrot.lane.b32.xlu0 %v1471_v59, %s6324_s27  ;;  %1473 = vrot.lane.b32.xlu1 %v1471_v59, %s6326_s0  ;;  %v1485_v21 = vrot.slane %v1471_v59, %v5757_v9 }
 0x511   : > { %1475 = vrot.lane.b32.xlu1 %v1471_v59, %s6328_s15 }
 0x515   : > { %1304 = vrot.lane.b32.xlu1 %v1302_v63, %s6326_s0 }
 0x519   : > { %1306 = vrot.lane.b32.xlu1 %v1302_v63, %s6328_s15 }
 0x51d   : > { %1308 = vrot.lane.b32.xlu1 %v1302_v63, %s6324_s27 }
 0x57f   : > { %v1478_v10 = vpop.permute.xlu0 %1477  ;;  %v1474_v11 = vpop.permute.xlu1 %1473 }
 0x580   : > { %v1527_v12 = vrot.slane %v1478_v10, %v5757_v9  ;;  %v1519_v14 = vrot.slane %v1474_v11, %v5757_v9 }
 0x582   : > { %v1528_v15 = vcombine.low %v1519_v14, %v1527_v12  ;;  %v1529_v16 = vcombine.high %v1519_v14, %v1527_v12 }
 0x583   : > { %v1476_v17 = vpop.permute.xlu1 %1475 }
 0x584   : > { %v1536_v18 = vrot.slane %v1528_v15, %v5760_v13  ;;  %v1543_v19 = vrot.slane %v1529_v16, %v5760_v13  ;;  %v1493_v20 = vrot.slane %v1476_v17, %v5757_v9 }
 0x586   : > { %v1544_v23 = vcombine.high %v1536_v18, %v5253_v22  ;;  %v1494_v24 = vcombine.low %v1485_v21, %v1493_v20  ;;  %v1495_v25 = vcombine.high %v1485_v21, %v1493_v20  ;;  %v1545_v27 = vcombine.high %v1543_v19, %v5253_v22 }
 0x587   : > { %v1305_v26 = vpop.permute.xlu1 %1304  ;;  %v1551_v30 = vshrl.u32 %v1536_v18, 16  ;;  %v1567_v32 = vshrl.u32 %v1543_v19, 16 }
 0x588   : > { %v1502_v28 = vrot.slane %v1494_v24, %v5760_v13  ;;  %v1509_v29 = vrot.slane %v1495_v25, %v5760_v13  ;;  %v1559_v31 = vshrl.u32 %v1544_v23, 16  ;;  %v1575_v41 = vshrl.u32 %v1545_v27, 16 }
 0x589   : > { %v1350_v62 = vrot.slane %v1305_v26, %v5757_v9 }
 0x58a   : > { %v1510_v34 = vcombine.high %v1502_v28, %v5253_v22  ;;  %v1511_v35 = vcombine.high %v1509_v29, %v5253_v22  ;;  %v1548_v36 = vpack.i.b16 %v1536_v18, %v1502_v28  ;;  %v1550_v37 = vshrl.u32 %v1502_v28, 16 }
 0x58b   : > { %v1307_v39 = vpop.permute.xlu1 %1306  ;;  %v1564_v43 = vpack.i.b16 %v1543_v19, %v1509_v29  ;;  %v1566_v44 = vshrl.u32 %v1509_v29, 16 }
 0x58c   : > { %v1324_v45 = vrot.slane %v1307_v39, %v5757_v9  ;;  %v1552_v46 = vpack.i.b16 %v1551_v30, %v1550_v37  ;;  %v1556_v48 = vpack.i.b16 %v1544_v23, %v1510_v34  ;;  %v1558_v49 = vshrl.u32 %v1510_v34, 16 }
 0x58d   : > { %v1572_v50 = vpack.i.b16 %v1545_v27, %v1511_v35  ;;  %v1568_v51 = vpack.i.b16 %v1567_v32, %v1566_v44  ;;  %v1574_v52 = vshrl.u32 %v1511_v35, 16  ;;  %v1578_v53 = vcombine.low %v1548_v36, %v1564_v43 }
 0x58e   : > { %v1325_v54 = vcombine.low %v1316_v33, %v1324_v45  ;;  %v1560_v55 = vpack.i.b16 %v1559_v31, %v1558_v49  ;;  %v1326_v57 = vcombine.high %v1316_v33, %v1324_v45 }
 0x58f   : > { %v1586_v56 = vcombine.low %v1556_v48, %v1572_v50  ;;  %v1309_v58 = vpop.permute.xlu1 %1308  ;;  %v1576_v59 = vpack.i.b16 %v1575_v41, %v1574_v52  ;;  %v1603_v60 = vcombine.low %v1552_v46, %v1568_v51  ;;  %v1585_v3 = vrot.slane %v1578_v53, %v5757_v9 }
 0x590   : > { %v1333_v61 = vrot.slane %v1325_v54, %v5760_v13  ;;  %v1340_v63 = vrot.slane %v1326_v57, %v5760_v13  ;;  %v1358_v1 = vrot.slane %v1309_v58, %v5757_v9 }
 0x591   : > { %v1593_v2 = vrot.slane %v1586_v56, %v5757_v9  ;;  %v1611_v4 = vcombine.low %v1560_v55, %v1576_v59  ;;  %v1610_v11 = vrot.slane %v1603_v60, %v5757_v9 }
 0x592   : > { %v1341_v5 = vcombine.high %v1333_v61, %v5253_v22  ;;  %v1359_v6 = vcombine.low %v1350_v62, %v1358_v1  ;;  %v1360_v7 = vcombine.high %v1350_v62, %v1358_v1  ;;  %v1342_v8 = vcombine.high %v1340_v63, %v5253_v22 }
 0x593   : > { %v1594_v10 = vcombine.low %v1585_v3, %v1593_v2  ;;  %v1618_v12 = vrot.slane %v1611_v4, %v5757_v9  ;;  %v1381_v14 = vshrl.u32 %v1333_v61, 16  ;;  %v1397_v18 = vshrl.u32 %v1340_v63, 16 }
 0x594   : > { %v1367_v15 = vrot.slane %v1359_v6, %v5760_v13  ;;  %v1374_v16 = vrot.slane %v1360_v7, %v5760_v13  ;;  %v1389_v17 = vshrl.u32 %v1341_v5, 16  ;;  %v1405_v26 = vshrl.u32 %v1342_v8, 16 }
 0x595   : > { %v1601_v19 = vrot.slane %v1594_v10, %v5760_v13  ;;  %v1619_v20 = vcombine.low %v1610_v11, %v1618_v12 }
 0x596   : > { %v1375_v21 = vcombine.high %v1367_v15, %v5253_v22  ;;  %v1376_v23 = vcombine.high %v1374_v16, %v5253_v22  ;;  %v1379_v24 = vpack.i.b16 %v1367_v15, %v1333_v61  ;;  %v1382_v25 = vshrl.u32 %v1367_v15, 16 }
 0x597   : > { %v1395_v27 = vpack.i.b16 %v1374_v16, %v1340_v63  ;;  %v1398_v28 = vshrl.u32 %v1374_v16, 16  ;;  %v1626_v29 = vrot.slane %v1619_v20, %v5760_v13  ;;  %v1631_v43 = vshrl.u32 %v1601_v19, 16 }
 0x598   : > { %v1383_v30 = vpack.i.b16 %v1382_v25, %v1381_v14  ;;  %v1387_v31 = vpack.i.b16 %v1375_v21, %v1341_v5  ;;  %v1390_v32 = vshrl.u32 %v1375_v21, 16  ;;  %v1403_v33 = vpack.i.b16 %v1376_v23, %v1342_v8 }
 0x599   : > { %v1399_v34 = vpack.i.b16 %v1398_v28, %v1397_v18  ;;  %v1406_v35 = vshrl.u32 %v1376_v23, 16  ;;  %v1409_v36 = vcombine.low %v1379_v24, %v1395_v27  ;;  %v1630_v37 = vpack.i.b16 %v1626_v29, %v1601_v19 }
 0x59a   : > { %v1391_v39 = vpack.i.b16 %v1390_v32, %v1389_v17  ;;  %v1417_v41 = vcombine.low %v1387_v31, %v1403_v33  ;;  %v1632_v44 = vshrl.u32 %v1626_v29, 16  ;;  %v1627_v53 = vcombine.high %v1626_v29, %v5253_v22 }
 0x59b   : > { %v1407_v45 = vpack.i.b16 %v1406_v35, %v1405_v26  ;;  %v1434_v46 = vcombine.low %v1383_v30, %v1399_v34  ;;  %v1814_v48 = vsel %vm1809_vm3, %v1630_v37, 0  ;;  %v1416_v49 = vrot.slane %v1409_v36, %v5757_v9 }
 0x59c   : > { %v1424_v50 = vrot.slane %v1417_v41, %v5757_v9  ;;  %4539 = vmatpush3.bf16.xpose.msra.mxu0 %v1814_v48  ;;  %v1633_v51 = vpack.i.b16 %v1632_v44, %v1631_v43  ;;  %v1602_v58 = vcombine.high %v1601_v19, %v5253_v22  ;;  %v1638_v61 = vshrl.u32 %v1627_v53, 16 }
 0x59d   : > { %v1442_v52 = vcombine.low %v1391_v39, %v1407_v45  ;;  %4550 = vmatprep.subr.bf16.mxu0 %v5246_v0  ;;  %v1441_v56 = vrot.slane %v1434_v46, %v5757_v9  ;;  %v4358_v45 = vld [vmem:[#allocation13] ss:$0 sm:$0xff] }
 0x59e   : > { %v1425_v54 = vcombine.low %v1416_v49, %v1424_v50  ;;  %v1860_v55 = vsel %vm1809_vm3, %v1633_v51, 0  ;;  %v1636_v63 = vpack.i.b16 %v1627_v53, %v1602_v58  ;;  %v1637_v1 = vshrl.u32 %v1602_v58, 16 }
 0x59f   : > { %v1449_v57 = vrot.slane %v1442_v52, %v5757_v9  ;;  %4545 = vmatpush3.bf16.xpose.msra.mxu1 %v1860_v55  ;;  %v1297_v46 = vadd.f32 %v4358_v45, %v5749_v47 }
 0x5a0   : > { %4556 = vmatprep.subr.bf16.mxu1 %v5246_v0  ;;  %v1432_v60 = vrot.slane %v1425_v54, %v5760_v13  ;;  %v1639_v5 = vpack.i.b16 %v1638_v61, %v1637_v1  ;;  %v1906_v6 = vsel %vm1809_vm3, %v1636_v63, 0 }
 0x5a1   : > { %v1450_v59 = vcombine.low %v1441_v56, %v1449_v57  ;;  %v1640_v48 = vpack.c.bf16 %v1297_v46, %v1297_v46 }
 0x5a2   : > { %v1462_v3 = vshrl.u32 %v1432_v60, 16  ;;  %v1952_v10 = vsel %vm1809_vm3, %v1639_v5, 0  ;;  %v1433_v11 = vcombine.high %v1432_v60, %v5253_v22 }
 0x5a3   : > { %v1457_v62 = vrot.slane %v1450_v59, %v5760_v13 }
 0x5a4   : > { %v1468_v15 = vshrl.u32 %v1433_v11, 16 }
 0x5a5   : > { %v1461_v2 = vpack.i.b16 %v1457_v62, %v1432_v60  ;;  %v1463_v4 = vshrl.u32 %v1457_v62, 16  ;;  %v1458_v8 = vcombine.high %v1457_v62, %v5253_v22 }
 0x5a7   : > { %4541 = vmatmul.mubr.msk.bf16.vlgmr.msra.gmra.mrb[12].mxu0 %vm1809_vm3, %v1461_v2  ;;  %v1464_v7 = vpack.i.b16 %v1463_v4, %v1462_v3  ;;  %v1469_v12 = vshrl.u32 %v1458_v8, 16  ;;  %v1467_v14 = vpack.i.b16 %v1458_v8, %v1433_v11 }
 0x5a8   : > { %4551 = vmatpush3.bf16.xpose.msra.mxu0 %v1906_v6  ;;  %4552 = vmatprep.mubr.msk.bf16.mxu0 %vm5247_vm0, %v5246_v0 }
 0x5a9   : > { %4547 = vmatmul.mubr.msk.bf16.vlgmr.msra.gmra.mrb[8].mxu1 %vm1809_vm3, %v1464_v7  ;;  %4562 = vmatprep.subr.bf16.mxu0 %v5246_v0  ;;  %v1470_v16 = vpack.i.b16 %v1469_v12, %v1468_v15  ;;  %v1654_v7 = vrot.slane %v1640_v48, %v5757_v9 }
 0x5aa   : > { %4557 = vmatpush3.bf16.xpose.msra.mxu1 %v1952_v10  ;;  %4558 = vmatprep.mubr.msk.bf16.mxu1 %vm5247_vm0, %v5246_v0 }
 0x5ab   : > { %4568 = vmatprep.subr.bf16.mxu1 %v5246_v0 }
 0x5af   : > { %4553 = vmatmul.mubr.msk.bf16.vlgmr.msra.gmra.mrb[16].mxu0 %vm1809_vm3, %v1467_v14 }
 0x5b0   : > { %4564 = vmatprep.mubr.msk.bf16.mxu0 %vm5247_vm0, %v5246_v0 }
 0x5b1   : > { %4559 = vmatmul.mubr.msk.bf16.vlgmr.msra.gmra.mrb[12].mxu1 %vm1809_vm3, %v1470_v16 }
 0x5b2   : > { %4570 = vmatprep.mubr.msk.bf16.mxu1 %vm5247_vm0, %v5246_v0 }
 0x67a   : > { %v1850_v17 = vpop.f32.mrb[12].mxu0 }
 0x67b   : > { %v1994_v18 = vmul.f32 0.35355338, %v1850_v17  ;;  %v4542_v19 = vpop.f32.mrb[13].mxu0 }
 0x67c   : > { %v1853_v20 = vpop.f32.mrb[14].mxu0  ;;  %v1896_v21 = vpop.f32.mrb[8].mxu1 }
 0x67d   : > { %v1995_v23 = vmul.f32 0.35355338, %v1896_v21  ;;  %v4543_v24 = vpop.f32.mrb[15].mxu0  ;;  %v4548_v25 = vpop.f32.mrb[9].mxu1  ;;  %v1998_v26 = vsel %vm1809_vm3, %v1994_v18, -inf }
 0x67e   : > { %v1899_v27 = vpop.f32.mrb[10].mxu1  ;;  %1999 = vmax.xlane.f32.xlu1 %v1998_v26 }
 0x67f   : > { %v4549_v28 = vpop.f32.mrb[11].mxu1  ;;  %v2001_v29 = vsel %vm1809_vm3, %v1995_v23, -inf }
 0x680   : > { %2002 = vmax.xlane.f32.xlu0 %v2001_v29 }
 0x682   : > { %v1942_v30 = vpop.f32.mrb[16].mxu0 }
 0x683   : > { %v1996_v31 = vmul.f32 0.35355338, %v1942_v30  ;;  %v4554_v32 = vpop.f32.mrb[17].mxu0 }
 0x684   : > { %v1945_v33 = vpop.f32.mrb[18].mxu0  ;;  %v1988_v34 = vpop.f32.mrb[12].mxu1 }
 0x685   : > { %v1997_v35 = vmul.f32 0.35355338, %v1988_v34  ;;  %v4555_v36 = vpop.f32.mrb[19].mxu0  ;;  %v4560_v37 = vpop.f32.mrb[13].mxu1  ;;  %v2004_v39 = vsel %vm1809_vm3, %v1996_v31, -inf }
 0x686   : > { %v1991_v41 = vpop.f32.mrb[14].mxu1  ;;  %2005 = vmax.xlane.f32.xlu1 %v2004_v39 }
 0x687   : > { %v4561_v43 = vpop.f32.mrb[15].mxu1  ;;  %v2007_v44 = vsel %vm1809_vm3, %v1997_v35, -inf }
 0x68a   : > { %2008 = vmax.xlane.f32.xlu1 %v2007_v44 }
 0x69b   : > { %1644 = vrot.lane.b32.xlu1 %v1640_v48, %s6328_s15 }
 0x70b   : > { %v2000_v49 = vpop.xlane.xlu1 %1999 }
 0x70c   : > { %v2010_v50 = vsub.f32 %v1994_v18, %v2000_v49 }
 0x70d   : > { %v2003_v51 = vpop.xlane.xlu0 %2002 }
 0x70e   : > { %v2014_v52 = vmul.f32 1.442695, %v2010_v50  ;;  %v2011_v53 = vsub.f32 %v1995_v23, %v2003_v51 }
 0x710   : > { %4861 = vpow2.f32 %v2014_v52  ;;  %v2016_v54 = vmul.f32 1.442695, %v2011_v53 }
 0x712   : > { %4863 = vpow2.f32 %v2016_v54 }
 0x713   : > { %v2006_v58 = vpop.xlane.xlu1 %2005 }
 0x714   : > { %v2012_v60 = vsub.f32 %v1996_v31, %v2006_v58 }
 0x716   : > { %v2018_v62 = vmul.f32 1.442695, %v2012_v60 }
 0x717   : > { %v2009_v59 = vpop.xlane.xlu1 %2008 }
 0x718   : > { %v2013_v61 = vsub.f32 %v1997_v35, %v2009_v59  ;;  %4865 = vpow2.f32 %v2018_v62 }
 0x71a   : > { %v5827_v55 = vpop.eup %4861  ;;  %v2020_v63 = vmul.f32 1.442695, %v2013_v61 }
 0x71b   : > { %v2022_v56 = vsel %vm1809_vm3, %v5827_v55, 0.0  ;;  %v1645_v5 = vpop.permute.xlu1 %1644 }
 0x71c   : > { %v5831_v57 = vpop.eup %4863  ;;  %2023 = vadd.xlane.f32.xlu0 %v2022_v56  ;;  %4867 = vpow2.f32 %v2020_v63  ;;  %v1662_v6 = vrot.slane %v1645_v5, %v5757_v9 }
 0x71d   : > { %v2025_v47 = vsel %vm1809_vm3, %v5831_v57, 0.0 }
 0x71e   : > { %2026 = vadd.xlane.f32.xlu1 %v2025_v47  ;;  %v1663_v8 = vcombine.low %v1654_v7, %v1662_v6  ;;  %v1664_v11 = vcombine.high %v1654_v7, %v1662_v6 }
 0x720   : > { %v1671_v14 = vrot.slane %v1663_v8, %v5760_v13  ;;  %v1678_v16 = vrot.slane %v1664_v11, %v5760_v13 }
 0x722   : > { %v5837_v1 = vpop.eup %4865  ;;  %v1679_v20 = vcombine.high %v1671_v14, %v5253_v22  ;;  %v1680_v24 = vcombine.high %v1678_v16, %v5253_v22  ;;  %v1719_v27 = vshrl.u32 %v1671_v14, 16  ;;  %v1735_v29 = vshrl.u32 %v1678_v16, 16 }
 0x723   : > { %v2028_v3 = vsel %vm1809_vm3, %v5837_v1, 0.0 }
 0x724   : > { %v1727_v28 = vshrl.u32 %v1679_v20, 16  ;;  %v1743_v34 = vshrl.u32 %v1680_v24, 16 }
 0x726   : > { %v5839_v2 = vpop.eup %4867 }
 0x727   : > { %v2031_v4 = vsel %vm1809_vm3, %v5839_v2, 0.0 }
 0x72f   : > { %1646 = vrot.lane.b32.xlu1 %v1640_v48, %s6324_s27  ;;  %s6395_s27 = smov 24  }
 0x732   : > { %1642 = vrot.lane.b32.xlu0 %v1640_v48, %s6326_s0  ;;  %s6389_s0 = sld [smem:[#allocation33_spill]] }
 0x738   : > { %s919_s28 = scalar_lea.vmem %s6389_s0, %s4422_s25  ;;  %s6396_s25 = sld [smem:[#allocation45_spill]] }
 0x751   : > { %2029 = vadd.xlane.f32.xlu0 %v2028_v3 }
 0x753   : > { %2032 = vadd.xlane.f32.xlu1 %v2031_v4 }
 0x7a9   : > { %v2024_v10 = vpop.xlane.xlu0 %2023 }
 0x7aa   : > { %4869 = vrcp.f32 %v2024_v10 }
 0x7ab   : > { %v2027_v12 = vpop.xlane.xlu1 %2026 }
 0x7ac   : > { %4871 = vrcp.f32 %v2027_v12 }
 0x7ad   : > { %v1643_v15 = vpop.permute.xlu0 %1642 }
 0x7ae   : > { %v1688_v18 = vrot.slane %v1643_v15, %v5757_v9 }
 0x7af   : > { %v1647_v17 = vpop.permute.xlu1 %1646 }
 0x7b0   : > { %v1696_v19 = vrot.slane %v1647_v17, %v5757_v9 }
 0x7b2   : > { %v1697_v21 = vcombine.low %v1688_v18, %v1696_v19  ;;  %v1698_v23 = vcombine.high %v1688_v18, %v1696_v19 }
 0x7b4   : > { %v1705_v25 = vrot.slane %v1697_v21, %v5760_v13  ;;  %v1712_v26 = vrot.slane %v1698_v23, %v5760_v13  ;;  %v4870_v60 = vpop.eup %4869 }
 0x7b5   : > { %v2038_v4 = vmul.f32 %v4870_v60, %v5827_v55 }
 0x7b6   : > { %v1713_v30 = vcombine.high %v1705_v25, %v5253_v22  ;;  %v1714_v31 = vcombine.high %v1712_v26, %v5253_v22  ;;  %v1717_v32 = vpack.i.b16 %v1705_v25, %v1671_v14  ;;  %v1720_v33 = vshrl.u32 %v1705_v25, 16  ;;  %v4872_v63 = vpop.eup %4871 }
 0x7b7   : > { %v1733_v35 = vpack.i.b16 %v1712_v26, %v1678_v16  ;;  %v1736_v36 = vshrl.u32 %v1712_v26, 16  ;;  %v2039_v10 = vmul.f32 %v4872_v63, %v5831_v57  ;;  %v2042_v18 = vpack.c.bf16 %v2038_v4, %v2038_v4 }
 0x7b8   : > { %v1721_v37 = vpack.i.b16 %v1720_v33, %v1719_v27  ;;  %v1725_v39 = vpack.i.b16 %v1713_v30, %v1679_v20  ;;  %v1728_v41 = vshrl.u32 %v1713_v30, 16  ;;  %v1741_v43 = vpack.i.b16 %v1714_v31, %v1680_v24  ;;  %v4843_v30 = vld [vmem:[%s6283_s14] sm:$0xff]  }
 0x7b9   : > { %v1737_v44 = vpack.i.b16 %v1736_v36, %v1735_v29  ;;  %v1744_v45 = vshrl.u32 %v1714_v31, 16  ;;  %v1747_v46 = vcombine.low %v1717_v32, %v1733_v35  ;;  %v2043_v20 = vpack.c.bf16 %v2039_v10, %v2039_v10 }
 0x7ba   : > { %v1729_v48 = vpack.i.b16 %v1728_v41, %v1727_v28  ;;  %v1755_v49 = vcombine.low %v1725_v39, %v1741_v43 }
 0x7bb   : > { %v1745_v50 = vpack.i.b16 %v1744_v45, %v1743_v34  ;;  %v1772_v51 = vcombine.low %v1721_v37, %v1737_v44  ;;  %v1754_v52 = vrot.slane %v1747_v46, %v5757_v9 }
 0x7bc   : > { %v1762_v53 = vrot.slane %v1755_v49, %v5757_v9 }
 0x7bd   : > { %v1780_v54 = vcombine.low %v1729_v48, %v1745_v50  ;;  %v1779_v47 = vrot.slane %v1772_v51, %v5757_v9 }
 0x7be   : > { %v1763_v56 = vcombine.low %v1754_v52, %v1762_v53 }
 0x7bf   : > { %v1787_v58 = vrot.slane %v1780_v54, %v5757_v9 }
 0x7c0   : > { %v1770_v59 = vrot.slane %v1763_v56, %v5760_v13 }
 0x7c1   : > { %v1788_v61 = vcombine.low %v1779_v47, %v1787_v58 }
 0x7c2   : > { %v1771_v62 = vcombine.high %v1770_v59, %v5253_v22  ;;  %v1800_v6 = vshrl.u32 %v1770_v59, 16 }
 0x7c3   : > { %v1795_v3 = vrot.slane %v1788_v61, %v5760_v13 }
 0x7c4   : > { %v1806_v11 = vshrl.u32 %v1771_v62, 16 }
 0x7c5   : > { %v1799_v5 = vpack.i.b16 %v1795_v3, %v1770_v59  ;;  %v1801_v7 = vshrl.u32 %v1795_v3, 16  ;;  %v1796_v8 = vcombine.high %v1795_v3, %v5253_v22 }
 0x7c7   : > { %v2051_v12 = vsel %vm2049_vm4, %v1799_v5, 0  ;;  %v1802_v14 = vpack.i.b16 %v1801_v7, %v1800_v6  ;;  %v1805_v15 = vpack.i.b16 %v1796_v8, %v1771_v62  ;;  %v1807_v16 = vshrl.u32 %v1796_v8, 16  ;;  %v4844_v62 = vld [vmem:[%s6283_s14 + $0x8] sm:$0xff]  }
 0x7c8   : > { %4563 = vmatpush3.bf16.msra.mxu0 %v2051_v12 }
 0x7c9   : > { %v2097_v17 = vsel %vm2049_vm4, %v1802_v14, 0  ;;  %4574 = vmatprep.subr.bf16.mxu0 %v5246_v0  ;;  %v1808_v55 = vpack.i.b16 %v1807_v16, %v1806_v11  ;;  %v2143_v19 = vsel %vm2049_vm4, %v1805_v15, 0 }
 0x7ca   : > { %4569 = vmatpush3.bf16.msra.mxu1 %v2097_v17 }
 0x7cb   : > { %4565 = vmatmul.mubr.msk.bf16.vlgmr.msra.gmra.mrb[20].mxu0 %vm1809_vm3, %v2042_v18  ;;  %4580 = vmatprep.subr.bf16.mxu1 %v5246_v0  ;;  %v2189_v57 = vsel %vm2049_vm4, %v1808_v55, 0 }
 0x7cc   : > { %4575 = vmatpush3.bf16.msra.mxu0 %v2143_v19  ;;  %4576 = vmatprep.mubr.msk.bf16.mxu0 %vm5247_vm0, %v5246_v0 }
 0x7cd   : > { %4571 = vmatmul.mubr.msk.bf16.vlgmr.msra.gmra.mrb[16].mxu1 %vm1809_vm3, %v2043_v20  ;;  %4586 = vmatprep.subr.bf16.mxu0 %v5246_v0 }
 0x7ce   : > { %4581 = vmatpush3.bf16.msra.mxu1 %v2189_v57  ;;  %4582 = vmatprep.mubr.msk.bf16.mxu1 %vm5247_vm0, %v5246_v0 }
 0x7cf   : > { %4594 = vmatprep.subr.bf16.mxu1 %v5246_v0 }
 0x7de   : > { %v2030_v21 = vpop.xlane.xlu0 %2029 }
 0x7df   : > { %4873 = vrcp.f32 %v2030_v21 }
 0x7e0   : > { %v2033_v23 = vpop.xlane.xlu1 %2032 }
 0x7e1   : > { %4875 = vrcp.f32 %v2033_v23 }
 0x7e9   : > { %v4874_v24 = vpop.eup %4873 }
 0x7ea   : > { %v2040_v25 = vmul.f32 %v4874_v24, %v5837_v1 }
 0x7eb   : > { %v4876_v26 = vpop.eup %4875 }
 0x7ec   : > { %v2041_v27 = vmul.f32 %v4876_v26, %v5839_v2  ;;  %v2044_v28 = vpack.c.bf16 %v2040_v25, %v2040_v25 }
 0x7ee   : > { %4577 = vmatmul.mubr.msk.bf16.vlgmr.msra.gmra.mrb[24].mxu0 %vm1809_vm3, %v2044_v28  ;;  %v2045_v29 = vpack.c.bf16 %v2041_v27, %v2041_v27 }
 0x7ef   : > { %4590 = vmatprep.mubr.msk.bf16.mxu0 %vm5247_vm0, %v5246_v0  ;;  %4587 = vmatpush3.bf16.msra.mxu0 %v4843_v30 }
 0x7f0   : > { %4583 = vmatmul.mubr.msk.bf16.vlgmr.msra.gmra.mrb[20].mxu1 %vm1809_vm3, %v2045_v29  ;;  %4588 = vmatprep.subr.bf16.mxu0 %v5246_v0 }
 0x7f1   : > { %4598 = vmatprep.mubr.msk.bf16.mxu1 %vm5247_vm0, %v5246_v0 }
 0x7f3   : > { %4589 = vmatpush3.bf16.msra.mxu0 %v4844_v62 }
 0x7f4   : > { %4602 = vmatprep.subr.bf16.mxu0 %v5246_v0 }
 0x89e   : > { %v2087_v1 = vpop.f32.mrb[20].mxu0 }
 0x89f   : > { %v4566_v2 = vpop.f32.mrb[21].mxu0 }
 0x8a0   : > { %v2090_v31 = vpop.f32.mrb[22].mxu0  ;;  %v2133_v32 = vpop.f32.mrb[16].mxu1 }
 0x8a1   : > { %v4567_v33 = vpop.f32.mrb[23].mxu0  ;;  %v4572_v34 = vpop.f32.mrb[17].mxu1 }
 0x8a2   : > { %v2136_v35 = vpop.f32.mrb[18].mxu1 }
 0x8a3   : > { %v4573_v36 = vpop.f32.mrb[19].mxu1 }
 0x8c1   : > { %v2179_v37 = vpop.f32.mrb[24].mxu0 }
 0x8c2   : > { %v2231_v39 = vcombine.low %v2087_v1, %v2179_v37  ;;  %v2232_v41 = vcombine.high %v2087_v1, %v2179_v37  ;;  %v4578_v43 = vpop.f32.mrb[25].mxu0 }
 0x8c3   : > { %v2182_v44 = vpop.f32.mrb[26].mxu0  ;;  %v2225_v45 = vpop.f32.mrb[20].mxu1  ;;  %v4845_v43 = vld [vmem:[%s6287_s18] sm:$0xff]  }
 0x8c4   : > { %v2247_v46 = vcombine.low %v2133_v32, %v2225_v45  ;;  %v2248_v48 = vcombine.high %v2133_v32, %v2225_v45  ;;  %v4579_v49 = vpop.f32.mrb[27].mxu0  ;;  %v4584_v50 = vpop.f32.mrb[21].mxu1  ;;  %v2239_v52 = vrot.slane %v2231_v39, %v5757_v9  ;;  %v2246_v53 = vrot.slane %v2232_v41, %v5757_v9  ;;  %v4372_v32 = vld [vmem:[#allocation14] ss:$0 sm:$0xff]  ;;  %v4848_v45 = vld [vmem:[%s6287_s18 + $0x18] sm:$0xff]  }
 0x8c5   : > { %v2228_v51 = vpop.f32.mrb[22].mxu1  ;;  %v4846_v44 = vld [vmem:[%s6287_s18 + $0x8] sm:$0xff]  }
 0x8c6   : > { %v2255_v54 = vrot.slane %v2247_v46, %v5757_v9  ;;  %v2262_v56 = vrot.slane %v2248_v48, %v5757_v9  ;;  %v4585_v47 = vpop.f32.mrb[23].mxu1  ;;  %v922_v46 = vld [vmem:[%s919_s28] sm:$0xff]  ;;  %v923_v48 = vld [vmem:[%s919_s28 + $0x8] sm:$0xff]  ;;  %s6400_s28 = sld [smem:[#allocation47_spill]] }
 0x8c7   : > { %v5943_v49 = vpack.c.bf16 %v923_v48, %v922_v46  ;;  %v4850_v47 = vld [vmem:[%s6285_s16 + $0x8] sm:$0xff]  }
 0x8c8   : > { %v2263_v58 = vcombine.low %v2239_v52, %v2255_v54  ;;  %v2264_v59 = vcombine.high %v2239_v52, %v2255_v54  ;;  %v2279_v60 = vcombine.low %v2246_v53, %v2262_v56  ;;  %v2280_v61 = vcombine.high %v2246_v53, %v2262_v56  ;;  %v4849_v56 = vld [vmem:[%s6285_s16] sm:$0xff]  }
 0x8c9   : > { %4595 = vmatpush3.bf16.msra.mxu1 %v4849_v56 }
 0x8ca   : > { %v2271_v63 = vrot.slane %v2263_v58, %v5760_v13  ;;  %v2278_v3 = vrot.slane %v2264_v59, %v5760_v13  ;;  %v2287_v4 = vrot.slane %v2279_v60, %v5760_v13  ;;  %v2294_v5 = vrot.slane %v2280_v61, %v5760_v13  ;;  %4596 = vmatprep.subr.bf16.mxu1 %v5246_v0  ;;  %v4380_v58 = vld [vmem:[%s6288_s19] ss:$0 sm:$0xff] }
 0x8cc   : > { %v2299_v6 = vcombine.low %v2271_v63, %v2278_v3  ;;  %v4370_v7 = vcombine.high %v2271_v63, %v2278_v3  ;;  %v2315_v8 = vcombine.low %v2287_v4, %v2294_v5  ;;  %v4371_v10 = vcombine.high %v2287_v4, %v2294_v5 }
 0x8cd   : > { %4597 = vmatpush3.bf16.msra.mxu1 %v4850_v47 }
 0x8ce   : > { %v2306_v11 = vrot.slane %v2299_v6, %v5757_v9  ;;  %v2314_v12 = vrot.slane %v4370_v7, %v5757_v9  ;;  %v2322_v14 = vrot.slane %v2315_v8, %v5757_v9  ;;  %v2330_v15 = vrot.slane %v4371_v10, %v5757_v9  ;;  %4614 = vmatprep.subr.bf16.mxu1 %v5246_v0 }
 0x8d0   : > { %v2332_v16 = vcombine.high %v2306_v11, %v2314_v12  ;;  %v2348_v17 = vcombine.high %v2322_v14, %v2330_v15  ;;  %v2331_v18 = vcombine.low %v2306_v11, %v2314_v12  ;;  %v2347_v55 = vcombine.low %v2322_v14, %v2330_v15  ;;  %v4851_v14 = vld [vmem:[%s6289_s20] sm:$0xff]  }
 0x8d2   : > { %v2346_v19 = vrot.slane %v2332_v16, %v5760_v13  ;;  %v2362_v20 = vrot.slane %v2348_v17, %v5760_v13  ;;  %v2339_v57 = vrot.slane %v2331_v18, %v5760_v13  ;;  %v2355_v21 = vrot.slane %v2347_v55, %v5760_v13  ;;  %v4852_v16 = vld [vmem:[%s6289_s20 + $0x8] sm:$0xff]  }
 0x8d4   : > { %v2365_v23 = vcombine.low %v2346_v19, %v2362_v20  ;;  %v2364_v24 = vcombine.high %v2339_v57, %v2355_v21  ;;  %v2366_v25 = vcombine.high %v2346_v19, %v2362_v20  ;;  %v2363_v26 = vcombine.low %v2339_v57, %v2355_v21 }
 0x8d5   : > { %v5984_v57 = vpack.i.b16 %v5253_v22, %v5253_v22 }
 0x8d6   : > { %2372 = vrot.lane.b32.xlu1 %v2365_v23, %s6323_s30  ;;  %2368 = vrot.lane.b32.xlu0 %v2364_v24, %s6322_s7  ;;  %s4419_s30 = sshll.u32 %s5414_s8, 7  ;;  %s5257_s8 = smov [#allocation17]  }
 0x8d7   : > { %s6226_s2 = scalar_lea.hbm %s6400_s28, %s4419_s30 }
 0x8da   : > { %2376 = vrot.lane.b32.xlu0 %v2366_v25, %s6321_s3  ;;  %s6390_s3 = smov 112  }
 0x948   : > { %v2369_v27 = vpop.permute.xlu0 %2368  ;;  %v2373_v28 = vpop.permute.xlu1 %2372 }
 0x949   : > { %v2379_v29 = vsel %vm1809_vm3, %v2363_v26, %v2369_v27 }
 0x94a   : > { %v2381_v1 = vsel %vm2380_vm5, %v2379_v29, %v2373_v28 }
 0x94c   : > { %v2377_v30 = vpop.permute.xlu0 %2376 }
 0x94d   : > { %v2383_v2 = vsel %vm2382_vm6, %v2381_v1, %v2377_v30 }
 0x94e   : > { %v2384_v31 = vpack.c.bf16 %v2383_v2, %v2383_v2 }
 0x950   : > { %4591 = vmatmul.mubr.msk.bf16.vlgmr.msra.gmra.mrb[28].mxu0 %vm951_vm1, %v2384_v31 }
 0x951   : > { %4610 = vmatprep.mubr.msk.bf16.mxu0 %vm5247_vm0, %v5246_v0  ;;  %4603 = vmatpush3.bf16.msra.mxu0 %v4845_v43 }
 0x952   : > { %4604 = vmatprep.subr.bf16.mxu0 %v5246_v0 }
 0x955   : > { %4605 = vmatpush3.bf16.msra.mxu0 %v4846_v44 }
 0x956   : > { %4606 = vmatprep.subr.bf16.mxu0 %v5246_v0 }
 0xa23   : > { %v2445_v33 = vpop.f32.mrb[28].mxu0 }
 0xa24   : > { %v2446_v34 = vadd.f32 %v4372_v32, %v2445_v33  ;;  %v4592_v35 = vpop.f32.mrb[29].mxu0 }
 0xa25   : > { %v2448_v36 = vpop.f32.mrb[30].mxu0 }
 0xa26   : > { %v4593_v37 = vpop.f32.mrb[31].mxu0  ;;  %v2451_v39 = vadd.f32 %v2446_v34, %v5728_v42  ;;  %v4847_v42 = vld [vmem:[%s6287_s18 + $0x10] sm:$0xff]  }
 0xa27   : > { %4607 = vmatpush3.bf16.msra.mxu0 %v4847_v42 }
 0xa28   : > { %v2452_v41 = vsel %vm951_vm1, %v2451_v39, 0.0  ;;  %4608 = vmatprep.subr.bf16.mxu0 %v5246_v0 }
 0xa29   : > { %2453 = vadd.xlane.f32.xlu1 %v2452_v41 }
 0xa2b   : > { %4609 = vmatpush3.bf16.msra.mxu0 %v4848_v45 }
 0xa2c   : > { %4626 = vmatprep.subr.bf16.mxu0 %v5246_v0 }
 0xa2e   : > { %4611 = vmatmul.mubr.msk.bf16.vlgmr.msra.gmra.mrb[32].mxu0 %vm1036_vm2, %v5943_v49 }
 0xa2f   : > { %4628 = vmatprep.mubr.msk.bf16.mxu0 %vm5247_vm0, %v5246_v0 }
 0xab6   : > { %v2454_v50 = vpop.xlane.xlu1 %2453 }
 0xab7   : > { %v2455_v51 = vmul.f32 0.03125, %v2454_v50 }
 0xab9   : > { %v2456_v52 = vsub.f32 %v2451_v39, %v2455_v51 }
 0xabb   : > { %v2457_v53 = vmul.f32 %v2456_v52, %v2456_v52 }
 0xabd   : > { %v2458_v54 = vsel %vm951_vm1, %v2457_v53, 0.0 }
 0xabe   : > { %2459 = vadd.xlane.f32.xlu0 %v2458_v54 }
 0xb01   : > { %v2610_v59 = vpop.f32.mrb[32].mxu0 }
 0xb02   : > { %v2611_v60 = vadd.f32 %v4380_v58, %v2610_v59  ;;  %v4612_v61 = vpop.f32.mrb[33].mxu0 }
 0xb03   : > { %v2613_v62 = vpop.f32.mrb[34].mxu0 }
 0xb04   : > { %v2614_v63 = vadd.f32 %v4380_v58, %v2613_v62  ;;  %v4613_v3 = vpop.f32.mrb[35].mxu0 }
 0xb06   : > { %v2866_v4 = vpack.c.bf16 %v2614_v63, %v2611_v60 }
 0xb08   : > { %2870 = vrot.lane.b32.xlu1 %v2866_v4, %s6390_s3  ;;  %2868 = vrot.lane.b32.xlu0 %v2866_v4, %s6391_s4  ;;  %v2878_v19 = vshrl.u32 %v2866_v4, 16 }
 0xb0c   : > { %2872 = vrot.lane.b32.xlu1 %v2866_v4, %s6392_s9 }
 0xb4b   : > { %v2460_v5 = vpop.xlane.xlu0 %2459 }
 0xb4c   : > { %v2461_v6 = vmul.f32 0.03125, %v2460_v5 }
 0xb4e   : > { %v2462_v7 = vadd.f32 1e-05, %v2461_v6 }
 0xb50   : > { %4877 = vrsqrt.f32 %v2462_v7  ;;  %v4854_v7 = vld [vmem:[%s6289_s20 + $0x18] sm:$0xff]  }
 0xb5a   : > { %v4878_v8 = vpop.eup %4877 }
 0xb5b   : > { %v2464_v10 = vmul.f32 %v4878_v8, %v2456_v52 }
 0xb5d   : > { %v2465_v11 = vmul.f32 %v5722_v38, %v2464_v10 }
 0xb5f   : > { %v5967_v12 = vadd.f32 %v5724_v40, %v2465_v11 }
 0xb61   : > { %v2467_v15 = vpack.c.bf16 %v5967_v12, %v5967_v12 }
 0xb63   : > { %4599 = vmatmul.mubr.msk.bf16.vlgmr.msra.gmra.mrb[24].mxu1 %vm951_vm1, %v2467_v15 }
 0xb64   : > { %4615 = vmatpush3.bf16.msra.mxu1 %v4851_v14  ;;  %4622 = vmatprep.mubr.msk.bf16.mxu1 %vm5247_vm0, %v5246_v0 }
 0xb65   : > { %4616 = vmatprep.subr.bf16.mxu1 %v5246_v0 }
 0xb68   : > { %4617 = vmatpush3.bf16.msra.mxu1 %v4852_v16 }
 0xb69   : > { %4618 = vmatprep.subr.bf16.mxu1 %v5246_v0 }
 0xb7a   : > { %v2871_v38 = vpop.permute.xlu1 %2870  ;;  %v2869_v40 = vpop.permute.xlu0 %2868 }
 0xb7b   : > { %v2886_v18 = vshrl.u32 %v2871_v38, 16  ;;  %v2879_v20 = vshrl.u32 %v2869_v40, 16  ;;  %v2876_v23 = vpack.i.b16 %v2869_v40, %v2866_v4  ;;  %v4853_v4 = vld [vmem:[%s6289_s20 + $0x10] sm:$0xff]  }
 0xb7c   : > { %4619 = vmatpush3.bf16.msra.mxu1 %v4853_v4 }
 0xb7d   : > { %v2880_v25 = vpack.i.b16 %v2879_v20, %v2878_v19  ;;  %v2896_v27 = vcombine.high %v2876_v23, %v5984_v57  ;;  %v2903_v1 = vrot.slane %v2876_v23, %v5757_v9  ;;  %4620 = vmatprep.subr.bf16.mxu1 %v5246_v0 }
 0xb7e   : > { %v2873_v17 = vpop.permute.xlu1 %2872 }
 0xb7f   : > { %v2887_v55 = vshrl.u32 %v2873_v17, 16  ;;  %v2884_v21 = vpack.i.b16 %v2873_v17, %v2871_v38  ;;  %v2962_v29 = vcombine.high %v2880_v25, %v5984_v57  ;;  %v2910_v32 = vrot.slane %v2896_v27, %v5757_v9 }
 0xb80   : > { %v2969_v33 = vrot.slane %v2880_v25, %v5757_v9  ;;  %4621 = vmatpush3.bf16.msra.mxu1 %v4854_v7 }
 0xb81   : > { %v2888_v24 = vpack.i.b16 %v2887_v55, %v2886_v18  ;;  %v2911_v26 = vcombine.high %v2884_v21, %v5984_v57  ;;  %v2918_v30 = vrot.slane %v2884_v21, %v5757_v9  ;;  %v2976_v35 = vrot.slane %v2962_v29, %v5757_v9  ;;  %4632 = vmatprep.subr.bf16.mxu1 %v5246_v0 }
 0xb83   : > { %v2977_v28 = vcombine.high %v2888_v24, %v5984_v57  ;;  %v2925_v2 = vrot.slane %v2911_v26, %v5757_v9  ;;  %v2984_v31 = vrot.slane %v2888_v24, %v5757_v9  ;;  %v2926_v36 = vcombine.low %v2903_v1, %v2918_v30  ;;  %4623 = vmatmul.mubr.msk.bf16.vlgmr.msra.gmra.mrb[28].mxu1 %vm1036_vm2, %v5943_v49 }
 0xb84   : > { %v2927_v37 = vcombine.high %v2903_v1, %v2918_v30  ;;  %4634 = vmatprep.mubr.msk.bf16.mxu1 %vm5247_vm0, %v5246_v0 }
 0xb85   : > { %v2991_v34 = vrot.slane %v2977_v28, %v5757_v9  ;;  %v2942_v39 = vcombine.low %v2910_v32, %v2925_v2  ;;  %v2943_v41 = vcombine.high %v2910_v32, %v2925_v2  ;;  %v2992_v43 = vcombine.low %v2969_v33, %v2984_v31 }
 0xb86   : > { %v2993_v44 = vcombine.high %v2969_v33, %v2984_v31  ;;  %v2934_v46 = vrot.slane %v2926_v36, %v5760_v13  ;;  %v2941_v48 = vrot.slane %v2927_v37, %v5760_v13 }
 0xb87   : > { %v3008_v42 = vcombine.low %v2976_v35, %v2991_v34  ;;  %v3009_v45 = vcombine.high %v2976_v35, %v2991_v34  ;;  %v2950_v50 = vrot.slane %v2942_v39, %v5760_v13  ;;  %v2957_v51 = vrot.slane %v2943_v41, %v5760_v13  ;;  %v4376_v34 = vld [vmem:[#allocation16] ss:$0 sm:$0xff] }
 0xb88   : > { %v3000_v52 = vrot.slane %v2992_v43, %v5760_v13  ;;  %v3007_v53 = vrot.slane %v2993_v44, %v5760_v13  ;;  %v3028_v47 = vcombine.low %v2934_v46, %v2941_v48  ;;  %v4392_v58 = vcombine.high %v2934_v46, %v2941_v48  ;;  %v4386_v44 = vld [vmem:[%s6290_s21] ss:$0 sm:$0xff] }
 0xb89   : > { %v3016_v54 = vrot.slane %v3008_v42, %v5760_v13  ;;  %v3023_v56 = vrot.slane %v3009_v45, %v5760_v13  ;;  %v3044_v59 = vcombine.low %v2950_v50, %v2957_v51  ;;  %v4393_v60 = vcombine.high %v2950_v50, %v2957_v51 }
 0xb8a   : > { %v3078_v61 = vcombine.low %v3000_v52, %v3007_v53  ;;  %v4394_v62 = vcombine.high %v3000_v52, %v3007_v53  ;;  %v3035_v5 = vrot.slane %v3028_v47, %v5757_v9  ;;  %v3043_v6 = vrot.slane %v4392_v58, %v5757_v9 }
 0xb8b   : > { %v3094_v63 = vcombine.low %v3016_v54, %v3023_v56  ;;  %v4395_v3 = vcombine.high %v3016_v54, %v3023_v56  ;;  %v3051_v8 = vrot.slane %v3044_v59, %v5757_v9  ;;  %v3059_v10 = vrot.slane %v4393_v60, %v5757_v9 }
 0xb8c   : > { %v3085_v11 = vrot.slane %v3078_v61, %v5757_v9  ;;  %v3093_v14 = vrot.slane %v4394_v62, %v5757_v9  ;;  %v3060_v38 = vcombine.low %v3035_v5, %v3043_v6 }
 0xb8d   : > { %v3101_v15 = vrot.slane %v3094_v63, %v5757_v9  ;;  %v3109_v16 = vrot.slane %v4395_v3, %v5757_v9  ;;  %v3068_v40 = vcombine.low %v3051_v8, %v3059_v10 }
 0xb8e   : > { %v3110_v17 = vcombine.low %v3085_v11, %v3093_v14  ;;  %v3067_v55 = vrot.slane %v3060_v38, %v5760_v13 }
 0xb8f   : > { %v3118_v18 = vcombine.low %v3101_v15, %v3109_v16  ;;  %v3075_v19 = vrot.slane %v3068_v40, %v5760_v13 }
 0xb90   : > { %v3117_v20 = vrot.slane %v3110_v17, %v5760_v13 }
 0xb91   : > { %v3125_v21 = vrot.slane %v3118_v18, %v5760_v13  ;;  %v3076_v23 = vcombine.low %v3067_v55, %v3075_v19  ;;  %v6028_v24 = vcombine.high %v3067_v55, %v3075_v19 }
 0xb93   : > { %v3126_v25 = vcombine.low %v3117_v20, %v3125_v21  ;;  %v6030_v26 = vcombine.high %v3117_v20, %v3125_v21  ;;  %v3131_v27 = vshrl.u32 %v3076_v23, 16  ;;  %v3137_v28 = vshrl.u32 %v6028_v24, 16 }
 0xb95   : > { %v3130_v29 = vpack.i.b16 %v3126_v25, %v3076_v23  ;;  %v3132_v30 = vshrl.u32 %v3126_v25, 16  ;;  %v3136_v1 = vpack.i.b16 %v6030_v26, %v6028_v24  ;;  %v3138_v2 = vshrl.u32 %v6030_v26, 16 }
 0xb97   : > { %v3416_v49 = vsel %vm1809_vm3, %v3130_v29, 0  ;;  %v3133_v31 = vpack.i.b16 %v3132_v30, %v3131_v27  ;;  %v6039_v32 = vpack.i.b16 %v3138_v2, %v3137_v28 }
 0xb98   : > { %4627 = vmatpush3.bf16.xpose.msra.mxu0 %v3416_v49 }
 0xb99   : > { %v3462_v33 = vsel %vm1809_vm3, %v3133_v31, 0  ;;  %4638 = vmatprep.subr.bf16.mxu0 %v5246_v0 }
 0xb9a   : > { %4633 = vmatpush3.bf16.xpose.msra.mxu1 %v3462_v33 }
 0xb9b   : > { %4644 = vmatprep.subr.bf16.mxu1 %v5246_v0 }
 0xc36   : > { %v2528_v35 = vpop.f32.mrb[24].mxu1 }
 0xc37   : > { %v2529_v36 = vadd.f32 %v4376_v34, %v2528_v35  ;;  %v4600_v37 = vpop.f32.mrb[25].mxu1 }
 0xc38   : > { %v2531_v39 = vpop.f32.mrb[26].mxu1 }
 0xc39   : > { %v2697_v41 = vpack.c.bf16 %v2529_v36, %v2529_v36  ;;  %v4601_v43 = vpop.f32.mrb[27].mxu1 }
 0xc3b   : > { %2701 = vrot.lane.b32.xlu1 %v2697_v41, %s6390_s3  ;;  %2699 = vrot.lane.b32.xlu0 %v2697_v41, %s6391_s4  ;;  %v2711_v56 = vrot.slane %v2697_v41, %v5757_v9 }
 0xc3f   : > { %2703 = vrot.lane.b32.xlu0 %v2697_v41, %s6392_s9 }
 0xc56   : > { %v2690_v42 = vpop.f32.mrb[28].mxu1 }
 0xc57   : > { %v2691_v45 = vadd.f32 %v4386_v44, %v2690_v42  ;;  %v4624_v46 = vpop.f32.mrb[29].mxu1 }
 0xc58   : > { %v2693_v48 = vpop.f32.mrb[30].mxu1 }
 0xc59   : > { %v2694_v50 = vadd.f32 %v4386_v44, %v2693_v48  ;;  %v4625_v51 = vpop.f32.mrb[31].mxu1  ;;  %v3508_v48 = vsel %vm1809_vm3, %v3136_v1, 0 }
 0xc5b   : > { %v6050_v52 = vpack.c.bf16 %v2694_v50, %v2691_v45 }
 0xcad   : > { %v2702_v53 = vpop.permute.xlu1 %2701  ;;  %v2700_v54 = vpop.permute.xlu0 %2699 }
 0xcae   : > { %v2719_v47 = vrot.slane %v2702_v53, %v5757_v9  ;;  %v2745_v63 = vrot.slane %v2700_v54, %v5757_v9  ;;  %v3554_v53 = vsel %vm1809_vm3, %v6039_v32, 0 }
 0xcb0   : > { %v2720_v58 = vcombine.low %v2711_v56, %v2719_v47  ;;  %v2721_v59 = vcombine.high %v2711_v56, %v2719_v47 }
 0xcb1   : > { %v2704_v60 = vpop.permute.xlu0 %2703 }
 0xcb2   : > { %v2728_v61 = vrot.slane %v2720_v58, %v5760_v13  ;;  %v2753_v62 = vrot.slane %v2704_v60, %v5757_v9  ;;  %v2735_v3 = vrot.slane %v2721_v59, %v5760_v13 }
 0xcb4   : > { %v2754_v4 = vcombine.low %v2745_v63, %v2753_v62  ;;  %v2755_v5 = vcombine.high %v2745_v63, %v2753_v62  ;;  %v2736_v6 = vcombine.high %v2728_v61, %v5253_v22  ;;  %v2737_v10 = vcombine.high %v2735_v3, %v5253_v22 }
 0xcb5   : > { %v2776_v11 = vshrl.u32 %v2728_v61, 16  ;;  %v2792_v17 = vshrl.u32 %v2735_v3, 16 }
 0xcb6   : > { %v2762_v7 = vrot.slane %v2754_v4, %v5760_v13  ;;  %v2769_v8 = vrot.slane %v2755_v5, %v5760_v13  ;;  %v2784_v40 = vshrl.u32 %v2736_v6, 16  ;;  %v2800_v25 = vshrl.u32 %v2737_v10, 16 }
 0xcb8   : > { %v2770_v14 = vcombine.high %v2762_v7, %v5253_v22  ;;  %v2771_v15 = vcombine.high %v2769_v8, %v5253_v22  ;;  %v2774_v16 = vpack.i.b16 %v2762_v7, %v2728_v61  ;;  %v2777_v38 = vshrl.u32 %v2762_v7, 16 }
 0xcb9   : > { %v2790_v18 = vpack.i.b16 %v2769_v8, %v2735_v3  ;;  %v2793_v55 = vshrl.u32 %v2769_v8, 16 }
 0xcba   : > { %v2778_v19 = vpack.i.b16 %v2777_v38, %v2776_v11  ;;  %v2782_v20 = vpack.i.b16 %v2770_v14, %v2736_v6  ;;  %v2785_v21 = vshrl.u32 %v2770_v14, 16  ;;  %v2798_v23 = vpack.i.b16 %v2771_v15, %v2737_v10 }
 0xcbb   : > { %v2794_v27 = vpack.i.b16 %v2793_v55, %v2792_v17  ;;  %v2801_v28 = vshrl.u32 %v2771_v15, 16  ;;  %v2804_v29 = vcombine.low %v2774_v16, %v2790_v18 }
 0xcbc   : > { %v2786_v30 = vpack.i.b16 %v2785_v21, %v2784_v40  ;;  %v2812_v2 = vcombine.low %v2782_v20, %v2798_v23 }
 0xcbd   : > { %v2802_v49 = vpack.i.b16 %v2801_v28, %v2800_v25  ;;  %v2829_v31 = vcombine.low %v2778_v19, %v2794_v27  ;;  %v2811_v33 = vrot.slane %v2804_v29, %v5757_v9 }
 0xcbe   : > { %v2819_v34 = vrot.slane %v2812_v2, %v5757_v9 }
 0xcbf   : > { %v2837_v35 = vcombine.low %v2786_v30, %v2802_v49  ;;  %v2836_v37 = vrot.slane %v2829_v31, %v5757_v9 }
 0xcc0   : > { %v2820_v36 = vcombine.low %v2811_v33, %v2819_v34  ;;  %v3152_v34 = vshrl.u32 %v6050_v52, 16 }
 0xcc1   : > { %v2844_v39 = vrot.slane %v2837_v35, %v5757_v9 }
 0xcc2   : > { %v2827_v43 = vrot.slane %v2820_v36, %v5760_v13 }
 0xcc3   : > { %v2845_v41 = vcombine.low %v2836_v37, %v2844_v39 }
 0xcc4   : > { %v2857_v45 = vshrl.u32 %v2827_v43, 16  ;;  %v2828_v54 = vcombine.high %v2827_v43, %v5253_v22 }
 0xcc5   : > { %v2852_v44 = vrot.slane %v2845_v41, %v5760_v13 }
 0xcc6   : > { %v2863_v1 = vshrl.u32 %v2828_v54, 16 }
 0xcc7   : > { %v2856_v42 = vpack.i.b16 %v2852_v44, %v2827_v43  ;;  %v2858_v46 = vshrl.u32 %v2852_v44, 16  ;;  %v2853_v51 = vcombine.high %v2852_v44, %v5253_v22 }
 0xcc9   : > { %4629 = vmatmul.mubr.msk.bf16.vlgmr.msra.gmra.mrb[36].mxu0 %vm1809_vm3, %v2856_v42  ;;  %v2859_v50 = vpack.i.b16 %v2858_v46, %v2857_v45  ;;  %v2864_v24 = vshrl.u32 %v2853_v51, 16  ;;  %v2862_v26 = vpack.i.b16 %v2853_v51, %v2828_v54 }
 0xcca   : > { %4639 = vmatpush3.bf16.xpose.msra.mxu0 %v3508_v48  ;;  %4640 = vmatprep.mubr.msk.bf16.mxu0 %vm5247_vm0, %v5246_v0 }
 0xccb   : > { %4635 = vmatmul.mubr.msk.bf16.vlgmr.msra.gmra.mrb[32].mxu1 %vm1809_vm3, %v2859_v50  ;;  %4650 = vmatprep.subr.bf16.mxu0 %v5246_v0  ;;  %v2865_v56 = vpack.i.b16 %v2864_v24, %v2863_v1 }
 0xccc   : > { %4645 = vmatpush3.bf16.xpose.msra.mxu1 %v3554_v53  ;;  %4646 = vmatprep.mubr.msk.bf16.mxu1 %vm5247_vm0, %v5246_v0 }
 0xccd   : > { %4656 = vmatprep.subr.bf16.mxu1 %v5246_v0 }
 0xcd1   : > { %4641 = vmatmul.mubr.msk.bf16.vlgmr.msra.gmra.mrb[40].mxu0 %vm1809_vm3, %v2862_v26 }
 0xcd2   : > { %4652 = vmatprep.mubr.msk.bf16.mxu0 %vm5247_vm0, %v5246_v0 }
 0xcd3   : > { %4647 = vmatmul.mubr.msk.bf16.vlgmr.msra.gmra.mrb[36].mxu1 %vm1809_vm3, %v2865_v56 }
 0xcd4   : > { %4658 = vmatprep.mubr.msk.bf16.mxu1 %vm5247_vm0, %v5246_v0 }
 0xd9c   : > { %v3452_v22 = vpop.f32.mrb[36].mxu0 }
 0xd9d   : > { %v3596_v32 = vmul.f32 0.35355338, %v3452_v22  ;;  %v4630_v47 = vpop.f32.mrb[37].mxu0 }
 0xd9e   : > { %v3455_v58 = vpop.f32.mrb[38].mxu0  ;;  %v3498_v59 = vpop.f32.mrb[32].mxu1 }
 0xd9f   : > { %v3597_v60 = vmul.f32 0.35355338, %v3498_v59  ;;  %v4631_v61 = vpop.f32.mrb[39].mxu0  ;;  %v4636_v62 = vpop.f32.mrb[33].mxu1  ;;  %v3600_v63 = vsel %vm2380_vm5, %v3596_v32, -inf }
 0xda0   : > { %v3501_v3 = vpop.f32.mrb[34].mxu1  ;;  %3601 = vmax.xlane.f32.xlu1 %v3600_v63 }
 0xda1   : > { %v4637_v4 = vpop.f32.mrb[35].mxu1  ;;  %v3603_v5 = vsel %vm2380_vm5, %v3597_v60, -inf }
 0xda2   : > { %3604 = vmax.xlane.f32.xlu0 %v3603_v5 }
 0xda4   : > { %v3544_v6 = vpop.f32.mrb[40].mxu0 }
 0xda5   : > { %v3598_v7 = vmul.f32 0.35355338, %v3544_v6  ;;  %v4642_v8 = vpop.f32.mrb[41].mxu0 }
 0xda6   : > { %v3547_v10 = vpop.f32.mrb[42].mxu0  ;;  %v3590_v11 = vpop.f32.mrb[36].mxu1 }
 0xda7   : > { %v3599_v14 = vmul.f32 0.35355338, %v3590_v11  ;;  %v4643_v15 = vpop.f32.mrb[43].mxu0  ;;  %v4648_v16 = vpop.f32.mrb[37].mxu1  ;;  %v3606_v38 = vsel %vm2380_vm5, %v3598_v7, -inf }
 0xda8   : > { %v3593_v40 = vpop.f32.mrb[38].mxu1  ;;  %3607 = vmax.xlane.f32.xlu0 %v3606_v38 }
 0xda9   : > { %v4649_v17 = vpop.f32.mrb[39].mxu1  ;;  %v3609_v18 = vsel %vm2380_vm5, %v3599_v14, -inf }
 0xdaa   : > { %3610 = vmax.xlane.f32.xlu1 %v3609_v18 }
 0xdbb   : > { %3144 = vrot.lane.b32.xlu1 %v6050_v52, %s6390_s3 }
 0xdbe   : > { %3142 = vrot.lane.b32.xlu0 %v6050_v52, %s6391_s4 }
 0xdbf   : > { %3146 = vrot.lane.b32.xlu1 %v6050_v52, %s6392_s9 }
 0xe2d   : > { %v3602_v55 = vpop.xlane.xlu1 %3601 }
 0xe2e   : > { %v3612_v19 = vsub.f32 %v3596_v32, %v3602_v55 }
 0xe2f   : > { %v3605_v20 = vpop.xlane.xlu0 %3604 }
 0xe30   : > { %v3616_v21 = vmul.f32 1.442695, %v3612_v19  ;;  %v3613_v23 = vsub.f32 %v3597_v60, %v3605_v20 }
 0xe32   : > { %4879 = vpow2.f32 %v3616_v21  ;;  %v3618_v25 = vmul.f32 1.442695, %v3613_v23 }
 0xe34   : > { %4881 = vpow2.f32 %v3618_v25 }
 0xe35   : > { %v3608_v27 = vpop.xlane.xlu0 %3607 }
 0xe36   : > { %v3614_v28 = vsub.f32 %v3598_v7, %v3608_v27 }
 0xe37   : > { %v3611_v29 = vpop.xlane.xlu1 %3610 }
 0xe38   : > { %v3620_v30 = vmul.f32 1.442695, %v3614_v28  ;;  %v3615_v2 = vsub.f32 %v3599_v14, %v3611_v29 }
 0xe39   : > { %v3143_v49 = vpop.permute.xlu0 %3142 }
 0xe3a   : > { %4883 = vpow2.f32 %v3620_v30  ;;  %v3622_v31 = vmul.f32 1.442695, %v3615_v2  ;;  %v3153_v33 = vshrl.u32 %v3143_v49, 16  ;;  %v3150_v35 = vpack.i.b16 %v3143_v49, %v6050_v52 }
 0xe3b   : > { %v3145_v36 = vpop.permute.xlu1 %3144 }
 0xe3c   : > { %v6104_v37 = vpop.eup %4879  ;;  %4885 = vpow2.f32 %v3622_v31  ;;  %v3154_v39 = vpack.i.b16 %v3153_v33, %v3152_v34  ;;  %v3164_v44 = vcombine.high %v3150_v35, %v5984_v57  ;;  %v3160_v46 = vshrl.u32 %v3145_v36, 16 }
 0xe3d   : > { %v3624_v41 = vsel %vm2380_vm5, %v6104_v37, 0.0  ;;  %v3171_v51 = vrot.slane %v3150_v35, %v5757_v9 }
 0xe3e   : > { %v6108_v43 = vpop.eup %4881  ;;  %3625 = vadd.xlane.f32.xlu0 %v3624_v41  ;;  %v3230_v50 = vcombine.high %v3154_v39, %v5984_v57  ;;  %v3178_v26 = vrot.slane %v3164_v44, %v5757_v9  ;;  %v3237_v58 = vrot.slane %v3154_v39, %v5757_v9 }
 0xe3f   : > { %v3147_v42 = vpop.permute.xlu1 %3146  ;;  %v3627_v45 = vsel %vm2380_vm5, %v6108_v43, 0.0 }
 0xe40   : > { %v3158_v48 = vpack.i.b16 %v3147_v42, %v3145_v36  ;;  %v3161_v52 = vshrl.u32 %v3147_v42, 16  ;;  %3628 = vadd.xlane.f32.xlu1 %v3627_v45  ;;  %v3244_v59 = vrot.slane %v3230_v50, %v5757_v9 }
 0xe42   : > { %v3162_v53 = vpack.i.b16 %v3161_v52, %v3160_v46  ;;  %v3179_v54 = vcombine.high %v3158_v48, %v5984_v57  ;;  %v3186_v24 = vrot.slane %v3158_v48, %v5757_v9 }
 0xe44   : > { %v6118_v1 = vpop.eup %4883  ;;  %v3193_v56 = vrot.slane %v3179_v54, %v5757_v9  ;;  %v3194_v22 = vcombine.low %v3171_v51, %v3186_v24  ;;  %v3195_v32 = vcombine.high %v3171_v51, %v3186_v24  ;;  %v3245_v47 = vcombine.high %v3162_v53, %v5984_v57 }
 0xe45   : > { %v3252_v60 = vrot.slane %v3162_v53, %v5757_v9  ;;  %v3630_v61 = vsel %vm2380_vm5, %v6118_v1, 0.0 }
 0xe46   : > { %v6127_v62 = vpop.eup %4885  ;;  %v3202_v63 = vrot.slane %v3194_v22, %v5760_v13  ;;  %v3209_v3 = vrot.slane %v3195_v32, %v5760_v13  ;;  %v3210_v4 = vcombine.low %v3178_v26, %v3193_v56  ;;  %v3211_v5 = vcombine.high %v3178_v26, %v3193_v56  ;;  %3631 = vadd.xlane.f32.xlu0 %v3630_v61 }
 0xe47   : > { %v3259_v57 = vrot.slane %v3245_v47, %v5757_v9  ;;  %v3260_v6 = vcombine.low %v3237_v58, %v3252_v60  ;;  %v3261_v7 = vcombine.high %v3237_v58, %v3252_v60  ;;  %v3633_v8 = vsel %vm2380_vm5, %v6127_v62, 0.0 }
 0xe48   : > { %v3218_v10 = vrot.slane %v3210_v4, %v5760_v13  ;;  %v3225_v11 = vrot.slane %v3211_v5, %v5760_v13  ;;  %v3296_v14 = vcombine.low %v3202_v63, %v3209_v3  ;;  %v4396_v15 = vcombine.high %v3202_v63, %v3209_v3 }
 0xe49   : > { %v3268_v16 = vrot.slane %v3260_v6, %v5760_v13  ;;  %v3275_v38 = vrot.slane %v3261_v7, %v5760_v13  ;;  %v3276_v40 = vcombine.low %v3244_v59, %v3259_v57  ;;  %v3277_v17 = vcombine.high %v3244_v59, %v3259_v57 }
 0xe4a   : > { %v3303_v18 = vrot.slane %v3296_v14, %v5757_v9  ;;  %v3311_v55 = vrot.slane %v4396_v15, %v5757_v9  ;;  %v3312_v19 = vcombine.low %v3218_v10, %v3225_v11  ;;  %v4397_v20 = vcombine.high %v3218_v10, %v3225_v11  ;;  %3634 = vadd.xlane.f32.xlu0 %v3633_v8 }
 0xe4b   : > { %v3284_v21 = vrot.slane %v3276_v40, %v5760_v13  ;;  %v3291_v23 = vrot.slane %v3277_v17, %v5760_v13  ;;  %v3346_v25 = vcombine.low %v3268_v16, %v3275_v38  ;;  %v4398_v27 = vcombine.high %v3268_v16, %v3275_v38 }
 0xe4c   : > { %v3319_v28 = vrot.slane %v3312_v19, %v5757_v9  ;;  %v3327_v29 = vrot.slane %v4397_v20, %v5757_v9  ;;  %v3328_v30 = vcombine.low %v3303_v18, %v3311_v55 }
 0xe4d   : > { %v3353_v2 = vrot.slane %v3346_v25, %v5757_v9  ;;  %v3361_v49 = vrot.slane %v4398_v27, %v5757_v9  ;;  %v3362_v31 = vcombine.low %v3284_v21, %v3291_v23  ;;  %v4399_v33 = vcombine.high %v3284_v21, %v3291_v23 }
 0xe4e   : > { %v3336_v34 = vcombine.low %v3319_v28, %v3327_v29  ;;  %v3335_v41 = vrot.slane %v3328_v30, %v5760_v13 }
 0xe4f   : > { %v3369_v35 = vrot.slane %v3362_v31, %v5757_v9  ;;  %v3377_v36 = vrot.slane %v4399_v33, %v5757_v9  ;;  %v3378_v39 = vcombine.low %v3353_v2, %v3361_v49 }
 0xe50   : > { %v3343_v44 = vrot.slane %v3336_v34, %v5760_v13 }
 0xe51   : > { %v3386_v42 = vcombine.low %v3369_v35, %v3377_v36  ;;  %v3385_v48 = vrot.slane %v3378_v39, %v5760_v13 }
 0xe52   : > { %v3344_v45 = vcombine.low %v3335_v41, %v3343_v44  ;;  %v3345_v46 = vcombine.high %v3335_v41, %v3343_v44 }
 0xe53   : > { %v3393_v52 = vrot.slane %v3386_v42, %v5760_v13  ;;  %v4856_v42 = vld [vmem:[%s6291_s22 + $0x8] sm:$0xff]  }
 0xe54   : > { %v3400_v53 = vshrl.u32 %v3344_v45, 16  ;;  %v3408_v54 = vshrl.u32 %v3345_v46, 16 }
 0xe55   : > { %v3394_v50 = vcombine.low %v3385_v48, %v3393_v52  ;;  %v3395_v51 = vcombine.high %v3385_v48, %v3393_v52 }
 0xe57   : > { %v3398_v24 = vpack.i.b16 %v3394_v50, %v3344_v45  ;;  %v3401_v26 = vshrl.u32 %v3394_v50, 16  ;;  %v3406_v56 = vpack.i.b16 %v3395_v51, %v3345_v46  ;;  %v3409_v22 = vshrl.u32 %v3395_v51, 16 }
 0xe59   : > { %4651 = vmatpush3.bf16.msra.mxu0 %v3398_v24  ;;  %v3402_v32 = vpack.i.b16 %v3401_v26, %v3400_v53  ;;  %v3410_v47 = vpack.i.b16 %v3409_v22, %v3408_v54 }
 0xe5a   : > { %4662 = vmatprep.subr.bf16.mxu0 %v5246_v0 }
 0xe5b   : > { %4657 = vmatpush3.bf16.msra.mxu1 %v3402_v32 }
 0xe5c   : > { %4668 = vmatprep.subr.bf16.mxu1 %v5246_v0 }
 0xecb   : > { %v3626_v58 = vpop.xlane.xlu0 %3625 }
 0xecc   : > { %4887 = vrcp.f32 %v3626_v58 }
 0xecd   : > { %v3629_v59 = vpop.xlane.xlu1 %3628 }
 0xece   : > { %4889 = vrcp.f32 %v3629_v59 }
 0xed3   : > { %v3632_v60 = vpop.xlane.xlu0 %3631 }
 0xed4   : > { %4891 = vrcp.f32 %v3632_v60 }
 0xed6   : > { %v4888_v61 = vpop.eup %4887 }
 0xed7   : > { %v3640_v63 = vmul.f32 %v4888_v61, %v6104_v37  ;;  %v3635_v3 = vpop.xlane.xlu0 %3634 }
 0xed8   : > { %v4890_v4 = vpop.eup %4889  ;;  %4893 = vrcp.f32 %v3635_v3 }
 0xed9   : > { %v3641_v5 = vmul.f32 %v4890_v4, %v6108_v43  ;;  %v3644_v57 = vpack.c.bf16 %v3640_v63, %v3640_v63 }
 0xedb   : > { %4653 = vmatmul.mubr.msk.bf16.vlgmr.msra.gmra.mrb[44].mxu0 %vm2380_vm5, %v3644_v57  ;;  %v3645_v6 = vpack.c.bf16 %v3641_v5, %v3641_v5 }
 0xedc   : > { %4663 = vmatpush3.bf16.msra.mxu0 %v3406_v56  ;;  %4664 = vmatprep.mubr.msk.bf16.mxu0 %vm5247_vm0, %v5246_v0 }
 0xedd   : > { %4659 = vmatmul.mubr.msk.bf16.vlgmr.msra.gmra.mrb[40].mxu1 %vm2380_vm5, %v3645_v6  ;;  %4674 = vmatprep.subr.bf16.mxu0 %v5246_v0 }
 0xede   : > { %v4892_v7 = vpop.eup %4891  ;;  %4669 = vmatpush3.bf16.msra.mxu1 %v3410_v47  ;;  %4670 = vmatprep.mubr.msk.bf16.mxu1 %vm5247_vm0, %v5246_v0 }
 0xedf   : > { %v3642_v37 = vmul.f32 %v4892_v7, %v6118_v1  ;;  %4682 = vmatprep.subr.bf16.mxu1 %v5246_v0  ;;  %v4855_v1 = vld [vmem:[%s6291_s22] sm:$0xff]  }
 0xee1   : > { %v3646_v43 = vpack.c.bf16 %v3642_v37, %v3642_v37 }
 0xee2   : > { %v4894_v8 = vpop.eup %4893 }
 0xee3   : > { %v3643_v10 = vmul.f32 %v4894_v8, %v6127_v62  ;;  %4665 = vmatmul.mubr.msk.bf16.vlgmr.msra.gmra.mrb[48].mxu0 %vm2380_vm5, %v3646_v43 }
 0xee4   : > { %4678 = vmatprep.mubr.msk.bf16.mxu0 %vm5247_vm0, %v5246_v0  ;;  %4675 = vmatpush3.bf16.msra.mxu0 %v4855_v1 }
 0xee5   : > { %v3647_v11 = vpack.c.bf16 %v3643_v10, %v3643_v10  ;;  %4676 = vmatprep.subr.bf16.mxu0 %v5246_v0 }
 0xee7   : > { %4671 = vmatmul.mubr.msk.bf16.vlgmr.msra.gmra.mrb[44].mxu1 %vm2380_vm5, %v3647_v11  ;;  %v4410_v11 = vld [vmem:[%s6292_s23] ss:$0 sm:$0xff] }
 0xee8   : > { %4686 = vmatprep.mubr.msk.bf16.mxu1 %vm5247_vm0, %v5246_v0  ;;  %4677 = vmatpush3.bf16.msra.mxu0 %v4856_v42 }
 0xfae   : > { %v3685_v14 = vpop.f32.mrb[44].mxu0 }
 0xfaf   : > { %v4654_v62 = vpop.f32.mrb[45].mxu0 }
 0xfb0   : > { %v3688_v15 = vpop.f32.mrb[46].mxu0  ;;  %v3728_v16 = vpop.f32.mrb[40].mxu1 }
 0xfb1   : > { %v4655_v38 = vpop.f32.mrb[47].mxu0  ;;  %v4660_v40 = vpop.f32.mrb[41].mxu1 }
 0xfb2   : > { %v3731_v17 = vpop.f32.mrb[42].mxu1 }
 0xfb3   : > { %v4661_v18 = vpop.f32.mrb[43].mxu1 }
 0xfb6   : > { %v3771_v55 = vpop.f32.mrb[48].mxu0 }
 0xfb7   : > { %v3820_v19 = vcombine.low %v3685_v14, %v3771_v55  ;;  %v3821_v20 = vcombine.high %v3685_v14, %v3771_v55  ;;  %v4666_v21 = vpop.f32.mrb[49].mxu0 }
 0xfb8   : > { %v3774_v23 = vpop.f32.mrb[50].mxu0  ;;  %v4857_v21 = vld [vmem:[%s6396_s25] sm:$0xff]  }
 0xfb9   : > { %v4667_v25 = vpop.f32.mrb[51].mxu0  ;;  %v3828_v49 = vrot.slane %v3820_v19, %v5757_v9  ;;  %v3835_v31 = vrot.slane %v3821_v20, %v5757_v9  ;;  %4683 = vmatpush3.bf16.msra.mxu1 %v4857_v21  ;;  %v4858_v23 = vld [vmem:[%s6396_s25 + $0x8] sm:$0xff]  }
 0xfba   : > { %v3814_v27 = vpop.f32.mrb[44].mxu1  ;;  %4684 = vmatprep.subr.bf16.mxu1 %v5246_v0 }
 0xfbb   : > { %v3836_v28 = vcombine.low %v3728_v16, %v3814_v27  ;;  %v3837_v29 = vcombine.high %v3728_v16, %v3814_v27  ;;  %v4672_v30 = vpop.f32.mrb[45].mxu1 }
 0xfbc   : > { %v3817_v2 = vpop.f32.mrb[46].mxu1  ;;  %v4899_v30 = vld [vmem:[#allocation2] ss:$0 sm:$0xff] }
 0xfbd   : > { %v3844_v33 = vrot.slane %v3836_v28, %v5757_v9  ;;  %v3851_v34 = vrot.slane %v3837_v29, %v5757_v9  ;;  %v4673_v35 = vpop.f32.mrb[47].mxu1  ;;  %4685 = vmatpush3.bf16.msra.mxu1 %v4858_v23 }
 0xfbf   : > { %v3852_v36 = vcombine.low %v3828_v49, %v3844_v33  ;;  %v3853_v39 = vcombine.high %v3828_v49, %v3844_v33  ;;  %v3868_v41 = vcombine.low %v3835_v31, %v3851_v34  ;;  %v3869_v44 = vcombine.high %v3835_v31, %v3851_v34  ;;  %v4900_v49 = vld [vmem:[#allocation5] ss:$0 sm:$0xff] }
 0xfc1   : > { %v3860_v45 = vrot.slane %v3852_v36, %v5760_v13  ;;  %v3867_v46 = vrot.slane %v3853_v39, %v5760_v13  ;;  %v3876_v48 = vrot.slane %v3868_v41, %v5760_v13  ;;  %v3883_v52 = vrot.slane %v3869_v44, %v5760_v13 }
 0xfc3   : > { %v3888_v50 = vcombine.low %v3860_v45, %v3867_v46  ;;  %v4408_v51 = vcombine.high %v3860_v45, %v3867_v46  ;;  %v3904_v53 = vcombine.low %v3876_v48, %v3883_v52  ;;  %v4409_v54 = vcombine.high %v3876_v48, %v3883_v52 }
 0xfc5   : > { %v3895_v24 = vrot.slane %v3888_v50, %v5757_v9  ;;  %v3903_v26 = vrot.slane %v4408_v51, %v5757_v9  ;;  %v3911_v56 = vrot.slane %v3904_v53, %v5757_v9  ;;  %v3919_v22 = vrot.slane %v4409_v54, %v5757_v9 }
 0xfc7   : > { %v3921_v32 = vcombine.high %v3895_v24, %v3903_v26  ;;  %v3937_v47 = vcombine.high %v3911_v56, %v3919_v22  ;;  %v3920_v58 = vcombine.low %v3895_v24, %v3903_v26  ;;  %v3936_v59 = vcombine.low %v3911_v56, %v3919_v22 }
 0xfc9   : > { %v3935_v60 = vrot.slane %v3921_v32, %v5760_v13  ;;  %v3951_v61 = vrot.slane %v3937_v47, %v5760_v13  ;;  %v3928_v63 = vrot.slane %v3920_v58, %v5760_v13  ;;  %v3944_v3 = vrot.slane %v3936_v59, %v5760_v13 }
 0xfcb   : > { %v3954_v4 = vcombine.low %v3935_v60, %v3951_v61  ;;  %v3953_v5 = vcombine.high %v3928_v63, %v3944_v3  ;;  %v3955_v57 = vcombine.high %v3935_v60, %v3951_v61  ;;  %v3952_v6 = vcombine.low %v3928_v63, %v3944_v3 }
 0xfcd   : > { %3961 = vrot.lane.b32.xlu0 %v3954_v4, %s6393_s1  ;;  %3957 = vrot.lane.b32.xlu1 %v3953_v5, %s6394_s10  ;;  %s6397_s1 = sld [smem:[#allocation46_spill]]  ;;  %s6398_s10 = sld [smem:[#allocation25_spill]] }
 0xfd1   : > { %3965 = vrot.lane.b32.xlu1 %v3955_v57, %s6395_s27  ;;  %s6399_s27 = sld [smem:[#allocation30_spill]] }
 0xfd3   : > { %v4414_v34 = vld [vmem:[%s6397_s1] ss:$0 sm:$0xff]  ;;  %s908_s0 = sand.u32 1, %s6398_s10   ;;  %s6401_s1 = smov %s6400_s28 }
 0xfd4   : > { %s4334_s15 = sshll.u32 %s908_s0, 3  ;;  %s4140_s10 = scalar_lea.sflag [#allocation4], %s908_s0 }
 0xfd5   : > { %s910_s7 = scalar_lea.vmem [#allocation17], %s4334_s15  ;;  %s5157_s15 = sshll.u32 %s5257_s8, 4  ;;  %s5158_s15 = int_to_ptr.vmem [resolvable:$false] %s5157_s15 }
 0xfd6   : > { %s4153_s3 = sshll.u32 %s910_s7, 4  ;;  %s5159_s6 = scalar_lea.vmem %s5158_s15, 256  ;;  %s6228_s3 = int_to_ptr.vmem [resolvable:$true] %s4153_s3 }
 0xfd7   : > { %s5153_s5 = scalar_lea.vmem %s6228_s3, 128  ;;  %p6402_p11 = scmp.ne.s32.totalorder %s6399_s27, 0 }
 0xfd8   : > { %p5154_p8 = scmp.ne.s32.totalorder %s6228_s3, %s5153_s5  ;;  %p5160_p0 = scmp.lt.s32.totalorder %s6228_s3, %s5158_s15 }
 0xfd9   : > { %p5161_p6 = scmp.lt.s32.totalorder %s5159_s6, %s5153_s5 }
 0xfda   : > { %p5155_p13 = pnand %p5154_p8, %p6402_p11 }
 0xfdb   : > { %p5162_p5 = por %p5161_p6, %p5160_p0 }
 0xfdc   : > { %p5156_p1 = pneg %p5155_p13 }
 0xfde   : > { %p5163_p9 = pnand %p5162_p5, %p5156_p1 }
0x103f   : > { %v3958_v9 = vpop.permute.xlu1 %3957  ;;  %v3962_v7 = vpop.permute.xlu0 %3961 }
0x1040   : > { %v3968_v37 = vsel %vm1809_vm3, %v3952_v6, %v3958_v9 }
0x1041   : > { %v3969_v8 = vsel %vm2380_vm5, %v3968_v37, %v3962_v7 }
0x1043   : > { %v3966_v43 = vpop.permute.xlu1 %3965 }
0x1044   : > { %v3970_v10 = vsel %vm2382_vm6, %v3969_v8, %v3966_v43 }
0x1045   : > { %v3971_v13 = vpack.c.bf16 %v3970_v10, %v3970_v10 }
0x1047   : > { %4679 = vmatmul.mubr.msk.bf16.vlgmr.msra.gmra.mrb[52].mxu0 %vm951_vm1, %v3971_v13 }
0x111a   : > { %v4032_v1 = vpop.f32.mrb[52].mxu0 }
0x111b   : > { %v4033_v14 = vadd.f32 %v4410_v11, %v4032_v1  ;;  %v4680_v62 = vpop.f32.mrb[53].mxu0 }
0x111c   : > { %v4035_v15 = vpop.f32.mrb[54].mxu0 }
0x111d   : > { %v4681_v16 = vpop.f32.mrb[55].mxu0  ;;  %v4038_v38 = vadd.f32 %v4033_v14, %v5967_v12 }
0x111f   : > { %v4039_v40 = vsel %vm951_vm1, %v4038_v38, 0.0 }
0x1120   : > { %4040 = vadd.xlane.f32.xlu1 %v4039_v40 }
0x11ad   : > { %v4041_v17 = vpop.xlane.xlu1 %4040 }
0x11ae   : > { %v4042_v18 = vmul.f32 0.03125, %v4041_v17 }
0x11b0   : > { %v4043_v55 = vsub.f32 %v4038_v38, %v4042_v18 }
0x11b2   : > { %v4044_v19 = vmul.f32 %v4043_v55, %v4043_v55 }
0x11b4   : > { %v4045_v20 = vsel %vm951_vm1, %v4044_v19, 0.0 }
0x11b5   : > { %4046 = vadd.xlane.f32.xlu0 %v4045_v20 }
0x1242   : > { %v4047_v12 = vpop.xlane.xlu0 %4046 }
0x1243   : > { %v4048_v25 = vmul.f32 0.03125, %v4047_v12 }
0x1245   : > { %v4049_v27 = vadd.f32 1e-05, %v4048_v25 }
0x1247   : > { %4895 = vrsqrt.f32 %v4049_v27 }
0x1251   : > { %v4896_v28 = vpop.eup %4895 }
0x1252   : > { %v4051_v29 = vmul.f32 %v4896_v28, %v4043_v55 }
0x1254   : > { %v4052_v2 = vmul.f32 %v4899_v30, %v4051_v29 }
0x1256   : > { %v4053_v31 = vadd.f32 %v4900_v49, %v4052_v2 }
0x1258   : > { %v4054_v33 = vpack.c.bf16 %v4053_v31, %v4053_v31 }
0x125a   : > { %4687 = vmatmul.mubr.msk.bf16.vlgmr.msra.gmra.mrb[48].mxu1 %vm951_vm1, %v4054_v33 }
0x132d   : > { %v4115_v35 = vpop.f32.mrb[48].mxu1 }
0x132e   : > { %v4116_v0 = vadd.f32 %v4414_v34, %v4115_v35  ;;  %v4688_v36 = vpop.f32.mrb[49].mxu1 }
0x132f   : > { %v4118_v39 = vpop.f32.mrb[50].mxu1 }
0x1330   : > { %v4121_v41 = vmax.f32 %v4116_v0, 0.0  ;;  %v4689_v44 = vpop.f32.mrb[51].mxu1 }
0x1332   : > { %v4122_v42 = vadd.f32 %v4121_v41, %v4053_v31 }
0x1334   : > { %v4123_v45 = vsel %vm951_vm1, %v4122_v42, 0.0 }
0x1335   : > { %4124 = vadd.xlane.f32.xlu0 %v4123_v45 }
0x13c2   : > { %v4125_v46 = vpop.xlane.xlu0 %4124 }
0x13c3   : > { %v4126_v48 = vmul.f32 0.03125, %v4125_v46 }
0x13c5   : > { %v4127_v52 = vsub.f32 %v4122_v42, %v4126_v48 }
0x13c7   : > { %v4128_v50 = vmul.f32 %v4127_v52, %v4127_v52 }
0x13c9   : > { %v4129_v51 = vsel %vm951_vm1, %v4128_v50, 0.0 }
0x13ca   : > { %4130 = vadd.xlane.f32.xlu1 %v4129_v51 }
0x1457   : > { %v4131_v53 = vpop.xlane.xlu1 %4130 }
0x1458   : > { %v4132_v54 = vmul.f32 0.03125, %v4131_v53 }
0x145a   : > { %v4133_v24 = vadd.f32 1e-05, %v4132_v54 }
0x145c   : > { %4897 = vrsqrt.f32 %v4133_v24 }
0x1466   : > { %v4898_v26 = vpop.eup %4897 }
0x1467   : > { %v4135_v56 = vmul.f32 %v4898_v26, %v4127_v52 }
0x1469   : > { %v4136_v22 = vmul.f32 %v4899_v30, %v4135_v56 }
0x146b   : > { %v4137_v32 = vadd.f32 %v4900_v49, %v4136_v22 }
0x146d   : > { %4138 = vst.msk [vmem:[%s910_s7] sm:$0xff] %vm951_vm1, %v4137_v32 }
0x146e   : > { %5166 = shalt.err (!%p5163_p9)
}
0x146f   : > { %s5167_s0 = scalar_lea.hbm %s6226_s2, 128  ;;  %s5171_s4 = scalar_lea.hbm %s6401_s1, 256 }
0x1470   : > { %p5168_p12 = scmp.ne.s32.totalorder %s6226_s2, %s5167_s0  ;;  %p5172_p3 = scmp.lt.u32.totalorder %s6226_s2, %s6401_s1 }
0x1471   : > { %p5173_p4 = scmp.lt.u32.totalorder %s5171_s4, %s5167_s0  ;;  %p5175_p8 = scmp.lt.u32.totalorder %s5167_s0, %s6226_s2 }
0x1472   : > { %p5169_p10 = pnand %p5168_p12, %p6402_p11 }
0x1473   : > { %p5174_p7 = por %p5173_p4, %p5172_p3 }
0x1474   : > { %p5170_p2 = pneg %p5169_p10 }
0x1475   : > { %p5176_p13 = por %p5175_p8, %p5174_p7 }
0x1477   : > { %p5177_p1 = pnand %p5176_p13, %p5170_p2 }
0x1479   : > { %5180 = shalt.err (!%p5177_p1)
}
0x147a   : > { %4726 = dma.vmem_to_hbm [thread:$0]  (%p6402_p11), %s6228_s3, 128, %s6226_s2, %s4140_s10  }
0x147b PF: > { %s6403_s6 = sld [smem:[#allocation27_spill]]  ;;  %s6404_s5 = sld [smem:[#allocation24_spill]] }
0x147c   : > { %s6405_s8 = sld [smem:[#allocation31_spill]] }
0x1481   : > { %p4778_p0 = scmp.ge.s32.totalorder %s6403_s6, 2  ;;  %s4165_s15 = sand.u32 1, %s6404_s5  }
0x1482   : > { %p6406_p6 = scmp.ne.s32.totalorder %s6405_s8, 0  ;;  %s4166_s30 = scalar_lea.sflag [#allocation4], %s4165_s15 }
0x1484   : > { %p4757_p5 = pnand %p4778_p0, %p6406_p6 }
0x1486   : > { %5218 = dma.done.wait (!%p4757_p5), %s4166_s30, 128  }
0x1487   : > { %5220 = vsyncadd (!%p4757_p5), %s4166_s30, 4294967168  ;;  %s6407_s28 = sld [smem:[#allocation28_spill]]  ;;  %s6408_s27 = sld [smem:[#allocation25_spill]] }
0x1488   : > { %s6409_s3 = sld [smem:[#allocation26_spill]]  ;;  %s6410_s7 = sld [smem:[#allocation29_spill]] }
0x148d   : > { %p41_p9 = scmp.ge.s32.totalorder %s6407_s28, 4  }
0x148f   :  { %43 = sbr.rel (!%p41_p9) target bundleno = 25 (0x19), region = 199 }
0x1496   :  { %4171 = vsyncpa [#allocation3], 1 }
0x1497   :  { %4173 = vsyncpa [#allocation3 + $0x1], 1 }
0x1498   :  { %4174 = vsyncpa [#allocation6], 1 }
0x1499   :  { %4175 = vsyncpa [#allocation9], 1 }
0x149a   :  { %4176 = vsyncpa [#allocation12], 1 }
0x149b   :  { %4177 = vsyncpa [#allocation15], 1 }
0x149c   :  { %4178 = vsyncpa [#allocation4], 1 }
0x149d   :  { %4180 = vsyncpa [#allocation4 + $0x1], 1 }

</bundles_post_ra>
